<compile_context>
chip_gen: v5e
topology: v5e:2x2
jax: 0.10.0
libtpu: 0.0.40
codegen_flags: <defaults>
</compile_context>

<pallas_src>
import functools
import math

import jax
import jax.numpy as jnp
import numpy as np
from jax.experimental import pallas as pl
from jax.experimental.pallas import tpu as pltpu  # noqa: F401  (TPU backend assumed)

# Model dims (small, consistent with the module's forward)
B = 2          # batch
S = 8          # sequence length
D = 32         # d_model
H = 4          # num heads
HD = D // H    # head dim
FF = 64        # feed-forward dim
NUM_LAYERS = 2
EPS = 1e-5


def _layernorm(x, gamma, beta):
    mu = jnp.mean(x, axis=-1, keepdims=True)
    var = jnp.mean((x - mu) * (x - mu), axis=-1, keepdims=True)
    return (x - mu) * jax.lax.rsqrt(var + EPS) * gamma + beta


def encoder_stack_kernel(num_layers,
                         x_ref,                       # (B*S, D)
                         wqkv_ref, bqkv_ref,          # (D, 3D), (1, 3D)
                         wo_ref,                      # (D, D)
                         w1_ref, b1_ref,              # (D, FF), (1, FF)
                         w2_ref,                      # (FF, D)
                         small_ref,                   # (6, D): bo,b2,ln1_g,ln1_b,ln2_g,ln2_b
                         out_ref, attn_ref):          # (B*S, D), (L, B, S, S)
    h = x_ref[...]                                    # (B*S, D)
    wqkv = wqkv_ref[...]
    bqkv = bqkv_ref[...]
    wo = wo_ref[...]
    w1 = w1_ref[...]
    b1 = b1_ref[...]
    w2 = w2_ref[...]
    bo = small_ref[0:1, :]
    b2 = small_ref[1:2, :]
    ln1_g = small_ref[2:3, :]
    ln1_b = small_ref[3:4, :]
    ln2_g = small_ref[4:5, :]
    ln2_b = small_ref[5:6, :]

    scale = 1.0 / math.sqrt(HD)
    inv_h = 1.0 / H

    for layer in range(num_layers):                   # static unrolled; weights shared
        # --- fused QKV projection over all B*S rows ---
        qkv = jnp.dot(h, wqkv, preferred_element_type=jnp.float32) + bqkv   # (B*S, 3D)
        q = qkv[:, 0:D] * scale                        # scale folded into q once
        k = qkv[:, D:2 * D]
        v = qkv[:, 2 * D:3 * D]

        ctx_rows = []
        for b in range(B):                             # static per-batch attention
            r0 = b * S
            qb = q[r0:r0 + S, :]                       # (S, D)
            kb = k[r0:r0 + S, :]
            vb = v[r0:r0 + S, :]
            attn_sum = jnp.zeros((S, S), jnp.float32)
            ctx_heads = []
            for hh in range(H):                        # static loop over heads
                c0 = hh * HD
                s = jnp.dot(qb[:, c0:c0 + HD], kb[:, c0:c0 + HD].T,
                            preferred_element_type=jnp.float32)             # (S, S)
                s = s - jnp.max(s, axis=-1, keepdims=True)
                p = jnp.exp(s)
                # exact reciprocal: attn weights are a checked output (1e-4 tol)
                p = p * pl.reciprocal(jnp.sum(p, axis=-1, keepdims=True),
                                      approx=False)
                attn_sum = attn_sum + p
                ctx_heads.append(jnp.dot(p, vb[:, c0:c0 + HD],
                                         preferred_element_type=jnp.float32))
            attn_ref[layer, b, :, :] = attn_sum * inv_h      # head-averaged weights
            ctx_rows.append(jnp.concatenate(ctx_heads, axis=1))             # (S, D)

        ctx = jnp.concatenate(ctx_rows, axis=0)                              # (B*S, D)
        attn_out = jnp.dot(ctx, wo, preferred_element_type=jnp.float32) + bo

        # --- add & norm 1 ---
        h1 = _layernorm(h + attn_out, ln1_g, ln1_b)

        # --- feed-forward (ReLU) ---
        ff = jnp.maximum(
            jnp.dot(h1, w1, preferred_element_type=jnp.float32) + b1, 0.0)
        ff = jnp.dot(ff, w2, preferred_element_type=jnp.float32) + b2

        # --- add & norm 2 ---
        h = _layernorm(h1 + ff, ln2_g, ln2_b)

    out_ref[...] = h


@functools.partial(jax.jit, static_argnames=("num_layers",))
def transformer_encoder_with_attn(src, params, num_layers=NUM_LAYERS):
    """Matches TransformerEncoderWithAttn.forward(src): all layers share weights."""
    # Pack tiny parameters (done once per call in XLA, negligible cost).
    wqkv = jnp.concatenate([params["wq"], params["wk"], params["wv"]], axis=1)   # (D, 3D)
    bqkv = jnp.concatenate([params["bq"], params["bk"], params["bv"]], axis=1)   # (1, 3D)
    small = jnp.concatenate(
        [params["bo"], params["b2"], params["ln1_g"], params["ln1_b"],
         params["ln2_g"], params["ln2_b"]], axis=0)                              # (6, D)
    x2d = src.reshape(B * S, D)

    flops = num_layers * (
        2 * (B * S) * D * (3 * D) +          # QKV projection
        B * H * 4 * S * S * HD +             # q@k.T and p@v
        2 * (B * S) * D * D +                # out projection
        2 * (B * S) * D * FF +               # FFN up
        2 * (B * S) * FF * D)                # FFN down
    bytes_accessed = 4 * (2 * B * S * D + D * 3 * D + 3 * D + D * D + D * FF
                          + FF + FF * D + 6 * D + num_layers * B * S * S)

    out2d, attn = pl.pallas_call(
        functools.partial(encoder_stack_kernel, num_layers),
        out_shape=(
            jax.ShapeDtypeStruct((B * S, D), jnp.float32),
            jax.ShapeDtypeStruct((num_layers, B, S, S), jnp.float32),
        ),
        cost_estimate=pl.CostEstimate(
            flops=flops,
            transcendentals=num_layers * B * H * S * S,
            bytes_accessed=bytes_accessed),
    )(x2d, wqkv, bqkv, params["wo"], params["w1"], params["b1"], params["w2"],
      small)

    output = out2d.reshape(B, S, D)
    attentions = [attn[l] for l in range(num_layers)]
    return output, attentions


# ---------------- pure-JAX reference (for verification) ----------------
def _ref_layer(x, p):
    q = x @ p["wq"] + p["bq"][0]
    k = x @ p["wk"] + p["bk"][0]
    v = x @ p["wv"] + p["bv"][0]
    qh = q.reshape(B, S, H, HD).transpose(0, 2, 1, 3)
    kh = k.reshape(B, S, H, HD).transpose(0, 2, 1, 3)
    vh = v.reshape(B, S, H, HD).transpose(0, 2, 1, 3)
    s = jnp.einsum("bhqd,bhkd->bhqk", qh, kh) / math.sqrt(HD)
    pw = jax.nn.softmax(s, axis=-1)
    ctx = jnp.einsum("bhqk,bhkd->bhqd", pw, vh).transpose(0, 2, 1, 3).reshape(B, S, D)
    attn_out = ctx @ p["wo"] + p["bo"][0]
    h1 = _layernorm(x + attn_out, p["ln1_g"][0], p["ln1_b"][0])
    ff = jnp.maximum(h1 @ p["w1"] + p["b1"][0], 0.0) @ p["w2"] + p["b2"][0]
    h2 = _layernorm(h1 + ff, p["ln2_g"][0], p["ln2_b"][0])
    return h2, pw.mean(axis=1)


def _ref_forward(src, params, num_layers):
    out = src
    attns = []
    for _ in range(num_layers):
        out, a = _ref_layer(out, params)
        attns.append(a)
    return out, attns


def _init_params(key):
    ks = jax.random.split(key, 8)
    scale = 0.1
    return {
        "wq": scale * jax.random.normal(ks[0], (D, D), jnp.float32),
        "wk": scale * jax.random.normal(ks[1], (D, D), jnp.float32),
        "wv": scale * jax.random.normal(ks[2], (D, D), jnp.float32),
        "wo": scale * jax.random.normal(ks[3], (D, D), jnp.float32),
        "w1": scale * jax.random.normal(ks[4], (D, FF), jnp.float32),
        "w2": scale * jax.random.normal(ks[5], (FF, D), jnp.float32),
        "bq": jnp.zeros((1, D), jnp.float32),
        "bk": jnp.zeros((1, D), jnp.float32),
        "bv": jnp.zeros((1, D), jnp.float32),
        "bo": jnp.zeros((1, D), jnp.float32),
        "b1": 0.01 * jnp.ones((1, FF), jnp.float32),
        "b2": 0.01 * jnp.ones((1, D), jnp.float32),
        "ln1_g": jnp.ones((1, D), jnp.float32),
        "ln1_b": jnp.zeros((1, D), jnp.float32),
        "ln2_g": jnp.ones((1, D), jnp.float32),
        "ln2_b": jnp.zeros((1, D), jnp.float32),
    }


if __name__ == "__main__":
    key = jax.random.PRNGKey(0)
    k_x, k_p = jax.random.split(key)
    src = jax.random.normal(k_x, (B, S, D), jnp.float32)   # (B, S, D) batch-first
    params = _init_params(k_p)

    out, attns = transformer_encoder_with_attn(src, params, num_layers=NUM_LAYERS)
    out = jax.block_until_ready(out)
    attns = [jax.block_until_ready(a) for a in attns]

    ref_out, ref_attns = _ref_forward(src, params, NUM_LAYERS)
    assert np.allclose(np.asarray(out), np.asarray(ref_out), atol=1e-4, rtol=1e-4)
    for a, ra in zip(attns, ref_attns):
        assert np.allclose(np.asarray(a), np.asarray(ra), atol=1e-4, rtol=1e-4)
    assert len(attns) == NUM_LAYERS and attns[0].shape == (B, S, S)

    print("KERNEL_OK")
</pallas_src>

<mosaic_0001>
module attributes {stable_mosaic.version = 11 : i64} {
  func.func @encoder_stack_kernel(%arg0: memref<16x32xf32, #tpu.memory_space<vmem>>, %arg1: memref<32x96xf32, #tpu.memory_space<vmem>>, %arg2: memref<1x96xf32, #tpu.memory_space<vmem>>, %arg3: memref<32x32xf32, #tpu.memory_space<vmem>>, %arg4: memref<32x64xf32, #tpu.memory_space<vmem>>, %arg5: memref<1x64xf32, #tpu.memory_space<vmem>>, %arg6: memref<64x32xf32, #tpu.memory_space<vmem>>, %arg7: memref<6x32xf32, #tpu.memory_space<vmem>>, %arg8: memref<16x32xf32, #tpu.memory_space<vmem>>, %arg9: memref<2x2x8x8xf32, #tpu.memory_space<vmem>>) attributes {dimension_semantics = [], scalar_prefetch = 0 : i64, scratch_operands = 0 : i64, tpu.core_type = #tpu.core_type<tc>} {
    %c0 = arith.constant 0 : index
    %c0_0 = arith.constant 0 : index
    %0 = vector.load %arg0[%c0, %c0_0] : memref<16x32xf32, #tpu.memory_space<vmem>>, vector<16x32xf32>
    %c0_1 = arith.constant 0 : index
    %c0_2 = arith.constant 0 : index
    %1 = vector.load %arg1[%c0_1, %c0_2] : memref<32x96xf32, #tpu.memory_space<vmem>>, vector<32x96xf32>
    %c0_3 = arith.constant 0 : index
    %c0_4 = arith.constant 0 : index
    %2 = vector.load %arg2[%c0_3, %c0_4] : memref<1x96xf32, #tpu.memory_space<vmem>>, vector<1x96xf32>
    %c0_5 = arith.constant 0 : index
    %c0_6 = arith.constant 0 : index
    %3 = vector.load %arg3[%c0_5, %c0_6] : memref<32x32xf32, #tpu.memory_space<vmem>>, vector<32x32xf32>
    %c0_7 = arith.constant 0 : index
    %c0_8 = arith.constant 0 : index
    %4 = vector.load %arg4[%c0_7, %c0_8] : memref<32x64xf32, #tpu.memory_space<vmem>>, vector<32x64xf32>
    %c0_9 = arith.constant 0 : index
    %c0_10 = arith.constant 0 : index
    %5 = vector.load %arg5[%c0_9, %c0_10] : memref<1x64xf32, #tpu.memory_space<vmem>>, vector<1x64xf32>
    %c0_11 = arith.constant 0 : index
    %c0_12 = arith.constant 0 : index
    %6 = vector.load %arg6[%c0_11, %c0_12] : memref<64x32xf32, #tpu.memory_space<vmem>>, vector<64x32xf32>
    %c0_13 = arith.constant 0 : index
    %c0_14 = arith.constant 0 : index
    %7 = vector.load %arg7[%c0_13, %c0_14] : memref<6x32xf32, #tpu.memory_space<vmem>>, vector<1x32xf32>
    %c1 = arith.constant 1 : index
    %c0_15 = arith.constant 0 : index
    %8 = vector.load %arg7[%c1, %c0_15] : memref<6x32xf32, #tpu.memory_space<vmem>>, vector<1x32xf32>
    %c2 = arith.constant 2 : index
    %c0_16 = arith.constant 0 : index
    %9 = vector.load %arg7[%c2, %c0_16] : memref<6x32xf32, #tpu.memory_space<vmem>>, vector<1x32xf32>
    %c3 = arith.constant 3 : index
    %c0_17 = arith.constant 0 : index
    %10 = vector.load %arg7[%c3, %c0_17] : memref<6x32xf32, #tpu.memory_space<vmem>>, vector<1x32xf32>
    %c4 = arith.constant 4 : index
    %c0_18 = arith.constant 0 : index
    %11 = vector.load %arg7[%c4, %c0_18] : memref<6x32xf32, #tpu.memory_space<vmem>>, vector<1x32xf32>
    %c5 = arith.constant 5 : index
    %c0_19 = arith.constant 0 : index
    %12 = vector.load %arg7[%c5, %c0_19] : memref<6x32xf32, #tpu.memory_space<vmem>>, vector<1x32xf32>
    %cst = arith.constant dense<0.000000e+00> : vector<16x96xf32>
    %13 = tpu.matmul %0, %1, %cst {dimension_numbers = #tpu.dot_dimension_numbers<[1], [0], [0], [1], [0, 0, 1, 1], [], []>} : vector<16x32xf32>, vector<32x96xf32>, vector<16x96xf32> -> vector<16x96xf32>
    %14 = vector.broadcast %2 : vector<1x96xf32> to vector<16x96xf32>
    %15 = arith.addf %13, %14 : vector<16x96xf32>
    %16 = vector.extract_strided_slice %15 {offsets = [0, 0], sizes = [16, 32], strides = [1, 1]} : vector<16x96xf32> to vector<16x32xf32>
    %cst_20 = arith.constant 0.353553385 : f32
    %17 = vector.broadcast %cst_20 : f32 to vector<16x32xf32>
    %18 = arith.mulf %16, %17 : vector<16x32xf32>
    %19 = vector.extract_strided_slice %15 {offsets = [0, 32], sizes = [16, 32], strides = [1, 1]} : vector<16x96xf32> to vector<16x32xf32>
    %20 = vector.extract_strided_slice %15 {offsets = [0, 64], sizes = [16, 32], strides = [1, 1]} : vector<16x96xf32> to vector<16x32xf32>
    %21 = vector.extract_strided_slice %18 {offsets = [0, 0], sizes = [8, 32], strides = [1, 1]} : vector<16x32xf32> to vector<8x32xf32>
    %22 = vector.extract_strided_slice %19 {offsets = [0, 0], sizes = [8, 32], strides = [1, 1]} : vector<16x32xf32> to vector<8x32xf32>
    %23 = vector.extract_strided_slice %20 {offsets = [0, 0], sizes = [8, 32], strides = [1, 1]} : vector<16x32xf32> to vector<8x32xf32>
    %cst_21 = arith.constant 0.000000e+00 : f32
    %24 = vector.broadcast %cst_21 : f32 to vector<8x8xf32>
    %25 = vector.extract_strided_slice %21 {offsets = [0, 0], sizes = [8, 8], strides = [1, 1]} : vector<8x32xf32> to vector<8x8xf32>
    %26 = vector.extract_strided_slice %22 {offsets = [0, 0], sizes = [8, 8], strides = [1, 1]} : vector<8x32xf32> to vector<8x8xf32>
    %27 = tpu.transpose %26, [1, 0] : vector<8x8xf32> -> vector<8x8xf32>
    %cst_22 = arith.constant dense<0.000000e+00> : vector<8x8xf32>
    %28 = tpu.matmul %25, %27, %cst_22 {dimension_numbers = #tpu.dot_dimension_numbers<[1], [0], [0], [1], [0, 0, 1, 1], [], []>} : vector<8x8xf32>, vector<8x8xf32>, vector<8x8xf32> -> vector<8x8xf32>
    %cst_23 = arith.constant dense<0xFF800000> : vector<8xf32>
    %29 = vector.multi_reduction <maximumf>, %28, %cst_23 [1] : vector<8x8xf32> to vector<8xf32>
    %30 = vector.shape_cast %29 : vector<8xf32> to vector<8x1xf32>
    %31 = vector.broadcast %30 : vector<8x1xf32> to vector<8x8xf32>
    %32 = arith.subf %28, %31 : vector<8x8xf32>
    %33 = math.exp %32 : vector<8x8xf32>
    %cst_24 = arith.constant dense<0.000000e+00> : vector<8xf32>
    %34 = vector.multi_reduction <add>, %33, %cst_24 [1] : vector<8x8xf32> to vector<8xf32>
    %35 = vector.shape_cast %34 : vector<8xf32> to vector<8x1xf32>
    %36 = tpu.reciprocal %35 : vector<8x1xf32> -> vector<8x1xf32>
    %37 = vector.broadcast %36 : vector<8x1xf32> to vector<8x8xf32>
    %38 = arith.mulf %33, %37 : vector<8x8xf32>
    %39 = arith.addf %24, %38 : vector<8x8xf32>
    %40 = vector.extract_strided_slice %23 {offsets = [0, 0], sizes = [8, 8], strides = [1, 1]} : vector<8x32xf32> to vector<8x8xf32>
    %cst_25 = arith.constant dense<0.000000e+00> : vector<8x8xf32>
    %41 = tpu.matmul %38, %40, %cst_25 {dimension_numbers = #tpu.dot_dimension_numbers<[1], [0], [0], [1], [0, 0, 1, 1], [], []>} : vector<8x8xf32>, vector<8x8xf32>, vector<8x8xf32> -> vector<8x8xf32>
    %42 = vector.extract_strided_slice %21 {offsets = [0, 8], sizes = [8, 8], strides = [1, 1]} : vector<8x32xf32> to vector<8x8xf32>
    %43 = vector.extract_strided_slice %22 {offsets = [0, 8], sizes = [8, 8], strides = [1, 1]} : vector<8x32xf32> to vector<8x8xf32>
    %44 = tpu.transpose %43, [1, 0] : vector<8x8xf32> -> vector<8x8xf32>
    %cst_26 = arith.constant dense<0.000000e+00> : vector<8x8xf32>
    %45 = tpu.matmul %42, %44, %cst_26 {dimension_numbers = #tpu.dot_dimension_numbers<[1], [0], [0], [1], [0, 0, 1, 1], [], []>} : vector<8x8xf32>, vector<8x8xf32>, vector<8x8xf32> -> vector<8x8xf32>
    %cst_27 = arith.constant dense<0xFF800000> : vector<8xf32>
    %46 = vector.multi_reduction <maximumf>, %45, %cst_27 [1] : vector<8x8xf32> to vector<8xf32>
    %47 = vector.shape_cast %46 : vector<8xf32> to vector<8x1xf32>
    %48 = vector.broadcast %47 : vector<8x1xf32> to vector<8x8xf32>
    %49 = arith.subf %45, %48 : vector<8x8xf32>
    %50 = math.exp %49 : vector<8x8xf32>
    %cst_28 = arith.constant dense<0.000000e+00> : vector<8xf32>
    %51 = vector.multi_reduction <add>, %50, %cst_28 [1] : vector<8x8xf32> to vector<8xf32>
    %52 = vector.shape_cast %51 : vector<8xf32> to vector<8x1xf32>
    %53 = tpu.reciprocal %52 : vector<8x1xf32> -> vector<8x1xf32>
    %54 = vector.broadcast %53 : vector<8x1xf32> to vector<8x8xf32>
    %55 = arith.mulf %50, %54 : vector<8x8xf32>
    %56 = arith.addf %39, %55 : vector<8x8xf32>
    %57 = vector.extract_strided_slice %23 {offsets = [0, 8], sizes = [8, 8], strides = [1, 1]} : vector<8x32xf32> to vector<8x8xf32>
    %cst_29 = arith.constant dense<0.000000e+00> : vector<8x8xf32>
    %58 = tpu.matmul %55, %57, %cst_29 {dimension_numbers = #tpu.dot_dimension_numbers<[1], [0], [0], [1], [0, 0, 1, 1], [], []>} : vector<8x8xf32>, vector<8x8xf32>, vector<8x8xf32> -> vector<8x8xf32>
    %59 = vector.extract_strided_slice %21 {offsets = [0, 16], sizes = [8, 8], strides = [1, 1]} : vector<8x32xf32> to vector<8x8xf32>
    %60 = vector.extract_strided_slice %22 {offsets = [0, 16], sizes = [8, 8], strides = [1, 1]} : vector<8x32xf32> to vector<8x8xf32>
    %61 = tpu.transpose %60, [1, 0] : vector<8x8xf32> -> vector<8x8xf32>
    %cst_30 = arith.constant dense<0.000000e+00> : vector<8x8xf32>
    %62 = tpu.matmul %59, %61, %cst_30 {dimension_numbers = #tpu.dot_dimension_numbers<[1], [0], [0], [1], [0, 0, 1, 1], [], []>} : vector<8x8xf32>, vector<8x8xf32>, vector<8x8xf32> -> vector<8x8xf32>
    %cst_31 = arith.constant dense<0xFF800000> : vector<8xf32>
    %63 = vector.multi_reduction <maximumf>, %62, %cst_31 [1] : vector<8x8xf32> to vector<8xf32>
    %64 = vector.shape_cast %63 : vector<8xf32> to vector<8x1xf32>
    %65 = vector.broadcast %64 : vector<8x1xf32> to vector<8x8xf32>
    %66 = arith.subf %62, %65 : vector<8x8xf32>
    %67 = math.exp %66 : vector<8x8xf32>
    %cst_32 = arith.constant dense<0.000000e+00> : vector<8xf32>
    %68 = vector.multi_reduction <add>, %67, %cst_32 [1] : vector<8x8xf32> to vector<8xf32>
    %69 = vector.shape_cast %68 : vector<8xf32> to vector<8x1xf32>
    %70 = tpu.reciprocal %69 : vector<8x1xf32> -> vector<8x1xf32>
    %71 = vector.broadcast %70 : vector<8x1xf32> to vector<8x8xf32>
    %72 = arith.mulf %67, %71 : vector<8x8xf32>
    %73 = arith.addf %56, %72 : vector<8x8xf32>
    %74 = vector.extract_strided_slice %23 {offsets = [0, 16], sizes = [8, 8], strides = [1, 1]} : vector<8x32xf32> to vector<8x8xf32>
    %cst_33 = arith.constant dense<0.000000e+00> : vector<8x8xf32>
    %75 = tpu.matmul %72, %74, %cst_33 {dimension_numbers = #tpu.dot_dimension_numbers<[1], [0], [0], [1], [0, 0, 1, 1], [], []>} : vector<8x8xf32>, vector<8x8xf32>, vector<8x8xf32> -> vector<8x8xf32>
    %76 = vector.extract_strided_slice %21 {offsets = [0, 24], sizes = [8, 8], strides = [1, 1]} : vector<8x32xf32> to vector<8x8xf32>
    %77 = vector.extract_strided_slice %22 {offsets = [0, 24], sizes = [8, 8], strides = [1, 1]} : vector<8x32xf32> to vector<8x8xf32>
    %78 = tpu.transpose %77, [1, 0] : vector<8x8xf32> -> vector<8x8xf32>
    %cst_34 = arith.constant dense<0.000000e+00> : vector<8x8xf32>
    %79 = tpu.matmul %76, %78, %cst_34 {dimension_numbers = #tpu.dot_dimension_numbers<[1], [0], [0], [1], [0, 0, 1, 1], [], []>} : vector<8x8xf32>, vector<8x8xf32>, vector<8x8xf32> -> vector<8x8xf32>
    %cst_35 = arith.constant dense<0xFF800000> : vector<8xf32>
    %80 = vector.multi_reduction <maximumf>, %79, %cst_35 [1] : vector<8x8xf32> to vector<8xf32>
    %81 = vector.shape_cast %80 : vector<8xf32> to vector<8x1xf32>
    %82 = vector.broadcast %81 : vector<8x1xf32> to vector<8x8xf32>
    %83 = arith.subf %79, %82 : vector<8x8xf32>
    %84 = math.exp %83 : vector<8x8xf32>
    %cst_36 = arith.constant dense<0.000000e+00> : vector<8xf32>
    %85 = vector.multi_reduction <add>, %84, %cst_36 [1] : vector<8x8xf32> to vector<8xf32>
    %86 = vector.shape_cast %85 : vector<8xf32> to vector<8x1xf32>
    %87 = tpu.reciprocal %86 : vector<8x1xf32> -> vector<8x1xf32>
    %88 = vector.broadcast %87 : vector<8x1xf32> to vector<8x8xf32>
    %89 = arith.mulf %84, %88 : vector<8x8xf32>
    %90 = arith.addf %73, %89 : vector<8x8xf32>
    %91 = vector.extract_strided_slice %23 {offsets = [0, 24], sizes = [8, 8], strides = [1, 1]} : vector<8x32xf32> to vector<8x8xf32>
    %cst_37 = arith.constant dense<0.000000e+00> : vector<8x8xf32>
    %92 = tpu.matmul %89, %91, %cst_37 {dimension_numbers = #tpu.dot_dimension_numbers<[1], [0], [0], [1], [0, 0, 1, 1], [], []>} : vector<8x8xf32>, vector<8x8xf32>, vector<8x8xf32> -> vector<8x8xf32>
    %cst_38 = arith.constant 2.500000e-01 : f32
    %93 = vector.broadcast %cst_38 : f32 to vector<8x8xf32>
    %94 = arith.mulf %90, %93 : vector<8x8xf32>
    %c0_39 = arith.constant 0 : index
    %c0_40 = arith.constant 0 : index
    %c0_41 = arith.constant 0 : index
    %c0_42 = arith.constant 0 : index
    %95 = vector.load %arg9[%c0_39, %c0_40, %c0_41, %c0_42] : memref<2x2x8x8xf32, #tpu.memory_space<vmem>>, vector<1x1x8x8xf32>
    %96 = vector.shape_cast %95 : vector<1x1x8x8xf32> to vector<8x8xf32>
    %97 = vector.shape_cast %94 : vector<8x8xf32> to vector<1x1x8x8xf32>
    tpu.vector_store %arg9[%c0_39, %c0_40, %c0_41, %c0_42], %97 {strides = array<i32>} : memref<2x2x8x8xf32, #tpu.memory_space<vmem>>, vector<1x1x8x8xf32>,
    %98 = tpu.concatenate %41, %58, %75, %92 in 1 : vector<8x8xf32>, vector<8x8xf32>, vector<8x8xf32>, vector<8x8xf32> -> vector<8x32xf32>
    %99 = vector.extract_strided_slice %18 {offsets = [8, 0], sizes = [8, 32], strides = [1, 1]} : vector<16x32xf32> to vector<8x32xf32>
    %100 = vector.extract_strided_slice %19 {offsets = [8, 0], sizes = [8, 32], strides = [1, 1]} : vector<16x32xf32> to vector<8x32xf32>
    %101 = vector.extract_strided_slice %20 {offsets = [8, 0], sizes = [8, 32], strides = [1, 1]} : vector<16x32xf32> to vector<8x32xf32>
    %cst_43 = arith.constant 0.000000e+00 : f32
    %102 = vector.broadcast %cst_43 : f32 to vector<8x8xf32>
    %103 = vector.extract_strided_slice %99 {offsets = [0, 0], sizes = [8, 8], strides = [1, 1]} : vector<8x32xf32> to vector<8x8xf32>
    %104 = vector.extract_strided_slice %100 {offsets = [0, 0], sizes = [8, 8], strides = [1, 1]} : vector<8x32xf32> to vector<8x8xf32>
    %105 = tpu.transpose %104, [1, 0] : vector<8x8xf32> -> vector<8x8xf32>
    %cst_44 = arith.constant dense<0.000000e+00> : vector<8x8xf32>
    %106 = tpu.matmul %103, %105, %cst_44 {dimension_numbers = #tpu.dot_dimension_numbers<[1], [0], [0], [1], [0, 0, 1, 1], [], []>} : vector<8x8xf32>, vector<8x8xf32>, vector<8x8xf32> -> vector<8x8xf32>
    %cst_45 = arith.constant dense<0xFF800000> : vector<8xf32>
    %107 = vector.multi_reduction <maximumf>, %106, %cst_45 [1] : vector<8x8xf32> to vector<8xf32>
    %108 = vector.shape_cast %107 : vector<8xf32> to vector<8x1xf32>
    %109 = vector.broadcast %108 : vector<8x1xf32> to vector<8x8xf32>
    %110 = arith.subf %106, %109 : vector<8x8xf32>
    %111 = math.exp %110 : vector<8x8xf32>
    %cst_46 = arith.constant dense<0.000000e+00> : vector<8xf32>
    %112 = vector.multi_reduction <add>, %111, %cst_46 [1] : vector<8x8xf32> to vector<8xf32>
    %113 = vector.shape_cast %112 : vector<8xf32> to vector<8x1xf32>
    %114 = tpu.reciprocal %113 : vector<8x1xf32> -> vector<8x1xf32>
    %115 = vector.broadcast %114 : vector<8x1xf32> to vector<8x8xf32>
    %116 = arith.mulf %111, %115 : vector<8x8xf32>
    %117 = arith.addf %102, %116 : vector<8x8xf32>
    %118 = vector.extract_strided_slice %101 {offsets = [0, 0], sizes = [8, 8], strides = [1, 1]} : vector<8x32xf32> to vector<8x8xf32>
    %cst_47 = arith.constant dense<0.000000e+00> : vector<8x8xf32>
    %119 = tpu.matmul %116, %118, %cst_47 {dimension_numbers = #tpu.dot_dimension_numbers<[1], [0], [0], [1], [0, 0, 1, 1], [], []>} : vector<8x8xf32>, vector<8x8xf32>, vector<8x8xf32> -> vector<8x8xf32>
    %120 = vector.extract_strided_slice %99 {offsets = [0, 8], sizes = [8, 8], strides = [1, 1]} : vector<8x32xf32> to vector<8x8xf32>
    %121 = vector.extract_strided_slice %100 {offsets = [0, 8], sizes = [8, 8], strides = [1, 1]} : vector<8x32xf32> to vector<8x8xf32>
    %122 = tpu.transpose %121, [1, 0] : vector<8x8xf32> -> vector<8x8xf32>
    %cst_48 = arith.constant dense<0.000000e+00> : vector<8x8xf32>
    %123 = tpu.matmul %120, %122, %cst_48 {dimension_numbers = #tpu.dot_dimension_numbers<[1], [0], [0], [1], [0, 0, 1, 1], [], []>} : vector<8x8xf32>, vector<8x8xf32>, vector<8x8xf32> -> vector<8x8xf32>
    %cst_49 = arith.constant dense<0xFF800000> : vector<8xf32>
    %124 = vector.multi_reduction <maximumf>, %123, %cst_49 [1] : vector<8x8xf32> to vector<8xf32>
    %125 = vector.shape_cast %124 : vector<8xf32> to vector<8x1xf32>
    %126 = vector.broadcast %125 : vector<8x1xf32> to vector<8x8xf32>
    %127 = arith.subf %123, %126 : vector<8x8xf32>
    %128 = math.exp %127 : vector<8x8xf32>
    %cst_50 = arith.constant dense<0.000000e+00> : vector<8xf32>
    %129 = vector.multi_reduction <add>, %128, %cst_50 [1] : vector<8x8xf32> to vector<8xf32>
    %130 = vector.shape_cast %129 : vector<8xf32> to vector<8x1xf32>
    %131 = tpu.reciprocal %130 : vector<8x1xf32> -> vector<8x1xf32>
    %132 = vector.broadcast %131 : vector<8x1xf32> to vector<8x8xf32>
    %133 = arith.mulf %128, %132 : vector<8x8xf32>
    %134 = arith.addf %117, %133 : vector<8x8xf32>
    %135 = vector.extract_strided_slice %101 {offsets = [0, 8], sizes = [8, 8], strides = [1, 1]} : vector<8x32xf32> to vector<8x8xf32>
    %cst_51 = arith.constant dense<0.000000e+00> : vector<8x8xf32>
    %136 = tpu.matmul %133, %135, %cst_51 {dimension_numbers = #tpu.dot_dimension_numbers<[1], [0], [0], [1], [0, 0, 1, 1], [], []>} : vector<8x8xf32>, vector<8x8xf32>, vector<8x8xf32> -> vector<8x8xf32>
    %137 = vector.extract_strided_slice %99 {offsets = [0, 16], sizes = [8, 8], strides = [1, 1]} : vector<8x32xf32> to vector<8x8xf32>
    %138 = vector.extract_strided_slice %100 {offsets = [0, 16], sizes = [8, 8], strides = [1, 1]} : vector<8x32xf32> to vector<8x8xf32>
    %139 = tpu.transpose %138, [1, 0] : vector<8x8xf32> -> vector<8x8xf32>
    %cst_52 = arith.constant dense<0.000000e+00> : vector<8x8xf32>
    %140 = tpu.matmul %137, %139, %cst_52 {dimension_numbers = #tpu.dot_dimension_numbers<[1], [0], [0], [1], [0, 0, 1, 1], [], []>} : vector<8x8xf32>, vector<8x8xf32>, vector<8x8xf32> -> vector<8x8xf32>
    %cst_53 = arith.constant dense<0xFF800000> : vector<8xf32>
    %141 = vector.multi_reduction <maximumf>, %140, %cst_53 [1] : vector<8x8xf32> to vector<8xf32>
    %142 = vector.shape_cast %141 : vector<8xf32> to vector<8x1xf32>
    %143 = vector.broadcast %142 : vector<8x1xf32> to vector<8x8xf32>
    %144 = arith.subf %140, %143 : vector<8x8xf32>
    %145 = math.exp %144 : vector<8x8xf32>
    %cst_54 = arith.constant dense<0.000000e+00> : vector<8xf32>
    %146 = vector.multi_reduction <add>, %145, %cst_54 [1] : vector<8x8xf32> to vector<8xf32>
    %147 = vector.shape_cast %146 : vector<8xf32> to vector<8x1xf32>
    %148 = tpu.reciprocal %147 : vector<8x1xf32> -> vector<8x1xf32>
    %149 = vector.broadcast %148 : vector<8x1xf32> to vector<8x8xf32>
    %150 = arith.mulf %145, %149 : vector<8x8xf32>
    %151 = arith.addf %134, %150 : vector<8x8xf32>
    %152 = vector.extract_strided_slice %101 {offsets = [0, 16], sizes = [8, 8], strides = [1, 1]} : vector<8x32xf32> to vector<8x8xf32>
    %cst_55 = arith.constant dense<0.000000e+00> : vector<8x8xf32>
    %153 = tpu.matmul %150, %152, %cst_55 {dimension_numbers = #tpu.dot_dimension_numbers<[1], [0], [0], [1], [0, 0, 1, 1], [], []>} : vector<8x8xf32>, vector<8x8xf32>, vector<8x8xf32> -> vector<8x8xf32>
    %154 = vector.extract_strided_slice %99 {offsets = [0, 24], sizes = [8, 8], strides = [1, 1]} : vector<8x32xf32> to vector<8x8xf32>
    %155 = vector.extract_strided_slice %100 {offsets = [0, 24], sizes = [8, 8], strides = [1, 1]} : vector<8x32xf32> to vector<8x8xf32>
    %156 = tpu.transpose %155, [1, 0] : vector<8x8xf32> -> vector<8x8xf32>
    %cst_56 = arith.constant dense<0.000000e+00> : vector<8x8xf32>
    %157 = tpu.matmul %154, %156, %cst_56 {dimension_numbers = #tpu.dot_dimension_numbers<[1], [0], [0], [1], [0, 0, 1, 1], [], []>} : vector<8x8xf32>, vector<8x8xf32>, vector<8x8xf32> -> vector<8x8xf32>
    %cst_57 = arith.constant dense<0xFF800000> : vector<8xf32>
    %158 = vector.multi_reduction <maximumf>, %157, %cst_57 [1] : vector<8x8xf32> to vector<8xf32>
    %159 = vector.shape_cast %158 : vector<8xf32> to vector<8x1xf32>
    %160 = vector.broadcast %159 : vector<8x1xf32> to vector<8x8xf32>
    %161 = arith.subf %157, %160 : vector<8x8xf32>
    %162 = math.exp %161 : vector<8x8xf32>
    %cst_58 = arith.constant dense<0.000000e+00> : vector<8xf32>
    %163 = vector.multi_reduction <add>, %162, %cst_58 [1] : vector<8x8xf32> to vector<8xf32>
    %164 = vector.shape_cast %163 : vector<8xf32> to vector<8x1xf32>
    %165 = tpu.reciprocal %164 : vector<8x1xf32> -> vector<8x1xf32>
    %166 = vector.broadcast %165 : vector<8x1xf32> to vector<8x8xf32>
    %167 = arith.mulf %162, %166 : vector<8x8xf32>
    %168 = arith.addf %151, %167 : vector<8x8xf32>
    %169 = vector.extract_strided_slice %101 {offsets = [0, 24], sizes = [8, 8], strides = [1, 1]} : vector<8x32xf32> to vector<8x8xf32>
    %cst_59 = arith.constant dense<0.000000e+00> : vector<8x8xf32>
    %170 = tpu.matmul %167, %169, %cst_59 {dimension_numbers = #tpu.dot_dimension_numbers<[1], [0], [0], [1], [0, 0, 1, 1], [], []>} : vector<8x8xf32>, vector<8x8xf32>, vector<8x8xf32> -> vector<8x8xf32>
    %cst_60 = arith.constant 2.500000e-01 : f32
    %171 = vector.broadcast %cst_60 : f32 to vector<8x8xf32>
    %172 = arith.mulf %168, %171 : vector<8x8xf32>
    %c0_61 = arith.constant 0 : index
    %c1_62 = arith.constant 1 : index
    %c0_63 = arith.constant 0 : index
    %c0_64 = arith.constant 0 : index
    %173 = vector.load %arg9[%c0_61, %c1_62, %c0_63, %c0_64] : memref<2x2x8x8xf32, #tpu.memory_space<vmem>>, vector<1x1x8x8xf32>
    %174 = vector.shape_cast %173 : vector<1x1x8x8xf32> to vector<8x8xf32>
    %175 = vector.shape_cast %172 : vector<8x8xf32> to vector<1x1x8x8xf32>
    tpu.vector_store %arg9[%c0_61, %c1_62, %c0_63, %c0_64], %175 {strides = array<i32>} : memref<2x2x8x8xf32, #tpu.memory_space<vmem>>, vector<1x1x8x8xf32>,
    %176 = tpu.concatenate %119, %136, %153, %170 in 1 : vector<8x8xf32>, vector<8x8xf32>, vector<8x8xf32>, vector<8x8xf32> -> vector<8x32xf32>
    %177 = tpu.concatenate %98, %176 in 0 : vector<8x32xf32>, vector<8x32xf32> -> vector<16x32xf32>
    %cst_65 = arith.constant dense<0.000000e+00> : vector<16x32xf32>
    %178 = tpu.matmul %177, %3, %cst_65 {dimension_numbers = #tpu.dot_dimension_numbers<[1], [0], [0], [1], [0, 0, 1, 1], [], []>} : vector<16x32xf32>, vector<32x32xf32>, vector<16x32xf32> -> vector<16x32xf32>
    %179 = vector.broadcast %7 : vector<1x32xf32> to vector<16x32xf32>
    %180 = arith.addf %178, %179 : vector<16x32xf32>
    %181 = arith.addf %0, %180 : vector<16x32xf32>
    %cst_66 = arith.constant dense<0.000000e+00> : vector<16xf32>
    %182 = vector.multi_reduction <add>, %181, %cst_66 [1] : vector<16x32xf32> to vector<16xf32>
    %183 = vector.shape_cast %182 : vector<16xf32> to vector<16x1xf32>
    %cst_67 = arith.constant 3.200000e+01 : f32
    %184 = vector.broadcast %cst_67 : f32 to vector<16x1xf32>
    %185 = arith.divf %183, %184 : vector<16x1xf32>
    %186 = vector.broadcast %185 : vector<16x1xf32> to vector<16x32xf32>
    %187 = arith.subf %181, %186 : vector<16x32xf32>
    %188 = vector.broadcast %185 : vector<16x1xf32> to vector<16x32xf32>
    %189 = arith.subf %181, %188 : vector<16x32xf32>
    %190 = arith.mulf %187, %189 : vector<16x32xf32>
    %cst_68 = arith.constant dense<0.000000e+00> : vector<16xf32>
    %191 = vector.multi_reduction <add>, %190, %cst_68 [1] : vector<16x32xf32> to vector<16xf32>
    %192 = vector.shape_cast %191 : vector<16xf32> to vector<16x1xf32>
    %cst_69 = arith.constant 3.200000e+01 : f32
    %193 = vector.broadcast %cst_69 : f32 to vector<16x1xf32>
    %194 = arith.divf %192, %193 : vector<16x1xf32>
    %195 = vector.broadcast %185 : vector<16x1xf32> to vector<16x32xf32>
    %196 = arith.subf %181, %195 : vector<16x32xf32>
    %cst_70 = arith.constant 9.99999974E-6 : f32
    %197 = vector.broadcast %cst_70 : f32 to vector<16x1xf32>
    %198 = arith.addf %194, %197 : vector<16x1xf32>
    %199 = math.rsqrt %198 : vector<16x1xf32>
    %200 = vector.broadcast %199 : vector<16x1xf32> to vector<16x32xf32>
    %201 = arith.mulf %196, %200 : vector<16x32xf32>
    %202 = vector.broadcast %9 : vector<1x32xf32> to vector<16x32xf32>
    %203 = arith.mulf %201, %202 : vector<16x32xf32>
    %204 = vector.broadcast %10 : vector<1x32xf32> to vector<16x32xf32>
    %205 = arith.addf %203, %204 : vector<16x32xf32>
    %cst_71 = arith.constant dense<0.000000e+00> : vector<16x64xf32>
    %206 = tpu.matmul %205, %4, %cst_71 {dimension_numbers = #tpu.dot_dimension_numbers<[1], [0], [0], [1], [0, 0, 1, 1], [], []>} : vector<16x32xf32>, vector<32x64xf32>, vector<16x64xf32> -> vector<16x64xf32>
    %207 = vector.broadcast %5 : vector<1x64xf32> to vector<16x64xf32>
    %208 = arith.addf %206, %207 : vector<16x64xf32>
    %cst_72 = arith.constant 0.000000e+00 : f32
    %209 = vector.broadcast %cst_72 : f32 to vector<16x64xf32>
    %210 = arith.maximumf %208, %209 : vector<16x64xf32>
    %cst_73 = arith.constant dense<0.000000e+00> : vector<16x32xf32>
    %211 = tpu.matmul %210, %6, %cst_73 {dimension_numbers = #tpu.dot_dimension_numbers<[1], [0], [0], [1], [0, 0, 1, 1], [], []>} : vector<16x64xf32>, vector<64x32xf32>, vector<16x32xf32> -> vector<16x32xf32>
    %212 = vector.broadcast %8 : vector<1x32xf32> to vector<16x32xf32>
    %213 = arith.addf %211, %212 : vector<16x32xf32>
    %214 = arith.addf %205, %213 : vector<16x32xf32>
    %cst_74 = arith.constant dense<0.000000e+00> : vector<16xf32>
    %215 = vector.multi_reduction <add>, %214, %cst_74 [1] : vector<16x32xf32> to vector<16xf32>
    %216 = vector.shape_cast %215 : vector<16xf32> to vector<16x1xf32>
    %cst_75 = arith.constant 3.200000e+01 : f32
    %217 = vector.broadcast %cst_75 : f32 to vector<16x1xf32>
    %218 = arith.divf %216, %217 : vector<16x1xf32>
    %219 = vector.broadcast %218 : vector<16x1xf32> to vector<16x32xf32>
    %220 = arith.subf %214, %219 : vector<16x32xf32>
    %221 = vector.broadcast %218 : vector<16x1xf32> to vector<16x32xf32>
    %222 = arith.subf %214, %221 : vector<16x32xf32>
    %223 = arith.mulf %220, %222 : vector<16x32xf32>
    %cst_76 = arith.constant dense<0.000000e+00> : vector<16xf32>
    %224 = vector.multi_reduction <add>, %223, %cst_76 [1] : vector<16x32xf32> to vector<16xf32>
    %225 = vector.shape_cast %224 : vector<16xf32> to vector<16x1xf32>
    %cst_77 = arith.constant 3.200000e+01 : f32
    %226 = vector.broadcast %cst_77 : f32 to vector<16x1xf32>
    %227 = arith.divf %225, %226 : vector<16x1xf32>
    %228 = vector.broadcast %218 : vector<16x1xf32> to vector<16x32xf32>
    %229 = arith.subf %214, %228 : vector<16x32xf32>
    %cst_78 = arith.constant 9.99999974E-6 : f32
    %230 = vector.broadcast %cst_78 : f32 to vector<16x1xf32>
    %231 = arith.addf %227, %230 : vector<16x1xf32>
    %232 = math.rsqrt %231 : vector<16x1xf32>
    %233 = vector.broadcast %232 : vector<16x1xf32> to vector<16x32xf32>
    %234 = arith.mulf %229, %233 : vector<16x32xf32>
    %235 = vector.broadcast %11 : vector<1x32xf32> to vector<16x32xf32>
    %236 = arith.mulf %234, %235 : vector<16x32xf32>
    %237 = vector.broadcast %12 : vector<1x32xf32> to vector<16x32xf32>
    %238 = arith.addf %236, %237 : vector<16x32xf32>
    %cst_79 = arith.constant dense<0.000000e+00> : vector<16x96xf32>
    %239 = tpu.matmul %238, %1, %cst_79 {dimension_numbers = #tpu.dot_dimension_numbers<[1], [0], [0], [1], [0, 0, 1, 1], [], []>} : vector<16x32xf32>, vector<32x96xf32>, vector<16x96xf32> -> vector<16x96xf32>
    %240 = vector.broadcast %2 : vector<1x96xf32> to vector<16x96xf32>
    %241 = arith.addf %239, %240 : vector<16x96xf32>
    %242 = vector.extract_strided_slice %241 {offsets = [0, 0], sizes = [16, 32], strides = [1, 1]} : vector<16x96xf32> to vector<16x32xf32>
    %cst_80 = arith.constant 0.353553385 : f32
    %243 = vector.broadcast %cst_80 : f32 to vector<16x32xf32>
    %244 = arith.mulf %242, %243 : vector<16x32xf32>
    %245 = vector.extract_strided_slice %241 {offsets = [0, 32], sizes = [16, 32], strides = [1, 1]} : vector<16x96xf32> to vector<16x32xf32>
    %246 = vector.extract_strided_slice %241 {offsets = [0, 64], sizes = [16, 32], strides = [1, 1]} : vector<16x96xf32> to vector<16x32xf32>
    %247 = vector.extract_strided_slice %244 {offsets = [0, 0], sizes = [8, 32], strides = [1, 1]} : vector<16x32xf32> to vector<8x32xf32>
    %248 = vector.extract_strided_slice %245 {offsets = [0, 0], sizes = [8, 32], strides = [1, 1]} : vector<16x32xf32> to vector<8x32xf32>
    %249 = vector.extract_strided_slice %246 {offsets = [0, 0], sizes = [8, 32], strides = [1, 1]} : vector<16x32xf32> to vector<8x32xf32>
    %cst_81 = arith.constant 0.000000e+00 : f32
    %250 = vector.broadcast %cst_81 : f32 to vector<8x8xf32>
    %251 = vector.extract_strided_slice %247 {offsets = [0, 0], sizes = [8, 8], strides = [1, 1]} : vector<8x32xf32> to vector<8x8xf32>
    %252 = vector.extract_strided_slice %248 {offsets = [0, 0], sizes = [8, 8], strides = [1, 1]} : vector<8x32xf32> to vector<8x8xf32>
    %253 = tpu.transpose %252, [1, 0] : vector<8x8xf32> -> vector<8x8xf32>
    %cst_82 = arith.constant dense<0.000000e+00> : vector<8x8xf32>
    %254 = tpu.matmul %251, %253, %cst_82 {dimension_numbers = #tpu.dot_dimension_numbers<[1], [0], [0], [1], [0, 0, 1, 1], [], []>} : vector<8x8xf32>, vector<8x8xf32>, vector<8x8xf32> -> vector<8x8xf32>
    %cst_83 = arith.constant dense<0xFF800000> : vector<8xf32>
    %255 = vector.multi_reduction <maximumf>, %254, %cst_83 [1] : vector<8x8xf32> to vector<8xf32>
    %256 = vector.shape_cast %255 : vector<8xf32> to vector<8x1xf32>
    %257 = vector.broadcast %256 : vector<8x1xf32> to vector<8x8xf32>
    %258 = arith.subf %254, %257 : vector<8x8xf32>
    %259 = math.exp %258 : vector<8x8xf32>
    %cst_84 = arith.constant dense<0.000000e+00> : vector<8xf32>
    %260 = vector.multi_reduction <add>, %259, %cst_84 [1] : vector<8x8xf32> to vector<8xf32>
    %261 = vector.shape_cast %260 : vector<8xf32> to vector<8x1xf32>
    %262 = tpu.reciprocal %261 : vector<8x1xf32> -> vector<8x1xf32>
    %263 = vector.broadcast %262 : vector<8x1xf32> to vector<8x8xf32>
    %264 = arith.mulf %259, %263 : vector<8x8xf32>
    %265 = arith.addf %250, %264 : vector<8x8xf32>
    %266 = vector.extract_strided_slice %249 {offsets = [0, 0], sizes = [8, 8], strides = [1, 1]} : vector<8x32xf32> to vector<8x8xf32>
    %cst_85 = arith.constant dense<0.000000e+00> : vector<8x8xf32>
    %267 = tpu.matmul %264, %266, %cst_85 {dimension_numbers = #tpu.dot_dimension_numbers<[1], [0], [0], [1], [0, 0, 1, 1], [], []>} : vector<8x8xf32>, vector<8x8xf32>, vector<8x8xf32> -> vector<8x8xf32>
    %268 = vector.extract_strided_slice %247 {offsets = [0, 8], sizes = [8, 8], strides = [1, 1]} : vector<8x32xf32> to vector<8x8xf32>
    %269 = vector.extract_strided_slice %248 {offsets = [0, 8], sizes = [8, 8], strides = [1, 1]} : vector<8x32xf32> to vector<8x8xf32>
    %270 = tpu.transpose %269, [1, 0] : vector<8x8xf32> -> vector<8x8xf32>
    %cst_86 = arith.constant dense<0.000000e+00> : vector<8x8xf32>
    %271 = tpu.matmul %268, %270, %cst_86 {dimension_numbers = #tpu.dot_dimension_numbers<[1], [0], [0], [1], [0, 0, 1, 1], [], []>} : vector<8x8xf32>, vector<8x8xf32>, vector<8x8xf32> -> vector<8x8xf32>
    %cst_87 = arith.constant dense<0xFF800000> : vector<8xf32>
    %272 = vector.multi_reduction <maximumf>, %271, %cst_87 [1] : vector<8x8xf32> to vector<8xf32>
    %273 = vector.shape_cast %272 : vector<8xf32> to vector<8x1xf32>
    %274 = vector.broadcast %273 : vector<8x1xf32> to vector<8x8xf32>
    %275 = arith.subf %271, %274 : vector<8x8xf32>
    %276 = math.exp %275 : vector<8x8xf32>
    %cst_88 = arith.constant dense<0.000000e+00> : vector<8xf32>
    %277 = vector.multi_reduction <add>, %276, %cst_88 [1] : vector<8x8xf32> to vector<8xf32>
    %278 = vector.shape_cast %277 : vector<8xf32> to vector<8x1xf32>
    %279 = tpu.reciprocal %278 : vector<8x1xf32> -> vector<8x1xf32>
    %280 = vector.broadcast %279 : vector<8x1xf32> to vector<8x8xf32>
    %281 = arith.mulf %276, %280 : vector<8x8xf32>
    %282 = arith.addf %265, %281 : vector<8x8xf32>
    %283 = vector.extract_strided_slice %249 {offsets = [0, 8], sizes = [8, 8], strides = [1, 1]} : vector<8x32xf32> to vector<8x8xf32>
    %cst_89 = arith.constant dense<0.000000e+00> : vector<8x8xf32>
    %284 = tpu.matmul %281, %283, %cst_89 {dimension_numbers = #tpu.dot_dimension_numbers<[1], [0], [0], [1], [0, 0, 1, 1], [], []>} : vector<8x8xf32>, vector<8x8xf32>, vector<8x8xf32> -> vector<8x8xf32>
    %285 = vector.extract_strided_slice %247 {offsets = [0, 16], sizes = [8, 8], strides = [1, 1]} : vector<8x32xf32> to vector<8x8xf32>
    %286 = vector.extract_strided_slice %248 {offsets = [0, 16], sizes = [8, 8], strides = [1, 1]} : vector<8x32xf32> to vector<8x8xf32>
    %287 = tpu.transpose %286, [1, 0] : vector<8x8xf32> -> vector<8x8xf32>
    %cst_90 = arith.constant dense<0.000000e+00> : vector<8x8xf32>
    %288 = tpu.matmul %285, %287, %cst_90 {dimension_numbers = #tpu.dot_dimension_numbers<[1], [0], [0], [1], [0, 0, 1, 1], [], []>} : vector<8x8xf32>, vector<8x8xf32>, vector<8x8xf32> -> vector<8x8xf32>
    %cst_91 = arith.constant dense<0xFF800000> : vector<8xf32>
    %289 = vector.multi_reduction <maximumf>, %288, %cst_91 [1] : vector<8x8xf32> to vector<8xf32>
    %290 = vector.shape_cast %289 : vector<8xf32> to vector<8x1xf32>
    %291 = vector.broadcast %290 : vector<8x1xf32> to vector<8x8xf32>
    %292 = arith.subf %288, %291 : vector<8x8xf32>
    %293 = math.exp %292 : vector<8x8xf32>
    %cst_92 = arith.constant dense<0.000000e+00> : vector<8xf32>
    %294 = vector.multi_reduction <add>, %293, %cst_92 [1] : vector<8x8xf32> to vector<8xf32>
    %295 = vector.shape_cast %294 : vector<8xf32> to vector<8x1xf32>
    %296 = tpu.reciprocal %295 : vector<8x1xf32> -> vector<8x1xf32>
    %297 = vector.broadcast %296 : vector<8x1xf32> to vector<8x8xf32>
    %298 = arith.mulf %293, %297 : vector<8x8xf32>
    %299 = arith.addf %282, %298 : vector<8x8xf32>
    %300 = vector.extract_strided_slice %249 {offsets = [0, 16], sizes = [8, 8], strides = [1, 1]} : vector<8x32xf32> to vector<8x8xf32>
    %cst_93 = arith.constant dense<0.000000e+00> : vector<8x8xf32>
    %301 = tpu.matmul %298, %300, %cst_93 {dimension_numbers = #tpu.dot_dimension_numbers<[1], [0], [0], [1], [0, 0, 1, 1], [], []>} : vector<8x8xf32>, vector<8x8xf32>, vector<8x8xf32> -> vector<8x8xf32>
    %302 = vector.extract_strided_slice %247 {offsets = [0, 24], sizes = [8, 8], strides = [1, 1]} : vector<8x32xf32> to vector<8x8xf32>
    %303 = vector.extract_strided_slice %248 {offsets = [0, 24], sizes = [8, 8], strides = [1, 1]} : vector<8x32xf32> to vector<8x8xf32>
    %304 = tpu.transpose %303, [1, 0] : vector<8x8xf32> -> vector<8x8xf32>
    %cst_94 = arith.constant dense<0.000000e+00> : vector<8x8xf32>
    %305 = tpu.matmul %302, %304, %cst_94 {dimension_numbers = #tpu.dot_dimension_numbers<[1], [0], [0], [1], [0, 0, 1, 1], [], []>} : vector<8x8xf32>, vector<8x8xf32>, vector<8x8xf32> -> vector<8x8xf32>
    %cst_95 = arith.constant dense<0xFF800000> : vector<8xf32>
    %306 = vector.multi_reduction <maximumf>, %305, %cst_95 [1] : vector<8x8xf32> to vector<8xf32>
    %307 = vector.shape_cast %306 : vector<8xf32> to vector<8x1xf32>
    %308 = vector.broadcast %307 : vector<8x1xf32> to vector<8x8xf32>
    %309 = arith.subf %305, %308 : vector<8x8xf32>
    %310 = math.exp %309 : vector<8x8xf32>
    %cst_96 = arith.constant dense<0.000000e+00> : vector<8xf32>
    %311 = vector.multi_reduction <add>, %310, %cst_96 [1] : vector<8x8xf32> to vector<8xf32>
    %312 = vector.shape_cast %311 : vector<8xf32> to vector<8x1xf32>
    %313 = tpu.reciprocal %312 : vector<8x1xf32> -> vector<8x1xf32>
    %314 = vector.broadcast %313 : vector<8x1xf32> to vector<8x8xf32>
    %315 = arith.mulf %310, %314 : vector<8x8xf32>
    %316 = arith.addf %299, %315 : vector<8x8xf32>
    %317 = vector.extract_strided_slice %249 {offsets = [0, 24], sizes = [8, 8], strides = [1, 1]} : vector<8x32xf32> to vector<8x8xf32>
    %cst_97 = arith.constant dense<0.000000e+00> : vector<8x8xf32>
    %318 = tpu.matmul %315, %317, %cst_97 {dimension_numbers = #tpu.dot_dimension_numbers<[1], [0], [0], [1], [0, 0, 1, 1], [], []>} : vector<8x8xf32>, vector<8x8xf32>, vector<8x8xf32> -> vector<8x8xf32>
    %cst_98 = arith.constant 2.500000e-01 : f32
    %319 = vector.broadcast %cst_98 : f32 to vector<8x8xf32>
    %320 = arith.mulf %316, %319 : vector<8x8xf32>
    %c1_99 = arith.constant 1 : index
    %c0_100 = arith.constant 0 : index
    %c0_101 = arith.constant 0 : index
    %c0_102 = arith.constant 0 : index
    %321 = vector.load %arg9[%c1_99, %c0_100, %c0_101, %c0_102] : memref<2x2x8x8xf32, #tpu.memory_space<vmem>>, vector<1x1x8x8xf32>
    %322 = vector.shape_cast %321 : vector<1x1x8x8xf32> to vector<8x8xf32>
    %323 = vector.shape_cast %320 : vector<8x8xf32> to vector<1x1x8x8xf32>
    tpu.vector_store %arg9[%c1_99, %c0_100, %c0_101, %c0_102], %323 {strides = array<i32>} : memref<2x2x8x8xf32, #tpu.memory_space<vmem>>, vector<1x1x8x8xf32>,
    %324 = tpu.concatenate %267, %284, %301, %318 in 1 : vector<8x8xf32>, vector<8x8xf32>, vector<8x8xf32>, vector<8x8xf32> -> vector<8x32xf32>
    %325 = vector.extract_strided_slice %244 {offsets = [8, 0], sizes = [8, 32], strides = [1, 1]} : vector<16x32xf32> to vector<8x32xf32>
    %326 = vector.extract_strided_slice %245 {offsets = [8, 0], sizes = [8, 32], strides = [1, 1]} : vector<16x32xf32> to vector<8x32xf32>
    %327 = vector.extract_strided_slice %246 {offsets = [8, 0], sizes = [8, 32], strides = [1, 1]} : vector<16x32xf32> to vector<8x32xf32>
    %cst_103 = arith.constant 0.000000e+00 : f32
    %328 = vector.broadcast %cst_103 : f32 to vector<8x8xf32>
    %329 = vector.extract_strided_slice %325 {offsets = [0, 0], sizes = [8, 8], strides = [1, 1]} : vector<8x32xf32> to vector<8x8xf32>
    %330 = vector.extract_strided_slice %326 {offsets = [0, 0], sizes = [8, 8], strides = [1, 1]} : vector<8x32xf32> to vector<8x8xf32>
    %331 = tpu.transpose %330, [1, 0] : vector<8x8xf32> -> vector<8x8xf32>
    %cst_104 = arith.constant dense<0.000000e+00> : vector<8x8xf32>
    %332 = tpu.matmul %329, %331, %cst_104 {dimension_numbers = #tpu.dot_dimension_numbers<[1], [0], [0], [1], [0, 0, 1, 1], [], []>} : vector<8x8xf32>, vector<8x8xf32>, vector<8x8xf32> -> vector<8x8xf32>
    %cst_105 = arith.constant dense<0xFF800000> : vector<8xf32>
    %333 = vector.multi_reduction <maximumf>, %332, %cst_105 [1] : vector<8x8xf32> to vector<8xf32>
    %334 = vector.shape_cast %333 : vector<8xf32> to vector<8x1xf32>
    %335 = vector.broadcast %334 : vector<8x1xf32> to vector<8x8xf32>
    %336 = arith.subf %332, %335 : vector<8x8xf32>
    %337 = math.exp %336 : vector<8x8xf32>
    %cst_106 = arith.constant dense<0.000000e+00> : vector<8xf32>
    %338 = vector.multi_reduction <add>, %337, %cst_106 [1] : vector<8x8xf32> to vector<8xf32>
    %339 = vector.shape_cast %338 : vector<8xf32> to vector<8x1xf32>
    %340 = tpu.reciprocal %339 : vector<8x1xf32> -> vector<8x1xf32>
    %341 = vector.broadcast %340 : vector<8x1xf32> to vector<8x8xf32>
    %342 = arith.mulf %337, %341 : vector<8x8xf32>
    %343 = arith.addf %328, %342 : vector<8x8xf32>
    %344 = vector.extract_strided_slice %327 {offsets = [0, 0], sizes = [8, 8], strides = [1, 1]} : vector<8x32xf32> to vector<8x8xf32>
    %cst_107 = arith.constant dense<0.000000e+00> : vector<8x8xf32>
    %345 = tpu.matmul %342, %344, %cst_107 {dimension_numbers = #tpu.dot_dimension_numbers<[1], [0], [0], [1], [0, 0, 1, 1], [], []>} : vector<8x8xf32>, vector<8x8xf32>, vector<8x8xf32> -> vector<8x8xf32>
    %346 = vector.extract_strided_slice %325 {offsets = [0, 8], sizes = [8, 8], strides = [1, 1]} : vector<8x32xf32> to vector<8x8xf32>
    %347 = vector.extract_strided_slice %326 {offsets = [0, 8], sizes = [8, 8], strides = [1, 1]} : vector<8x32xf32> to vector<8x8xf32>
    %348 = tpu.transpose %347, [1, 0] : vector<8x8xf32> -> vector<8x8xf32>
    %cst_108 = arith.constant dense<0.000000e+00> : vector<8x8xf32>
    %349 = tpu.matmul %346, %348, %cst_108 {dimension_numbers = #tpu.dot_dimension_numbers<[1], [0], [0], [1], [0, 0, 1, 1], [], []>} : vector<8x8xf32>, vector<8x8xf32>, vector<8x8xf32> -> vector<8x8xf32>
    %cst_109 = arith.constant dense<0xFF800000> : vector<8xf32>
    %350 = vector.multi_reduction <maximumf>, %349, %cst_109 [1] : vector<8x8xf32> to vector<8xf32>
    %351 = vector.shape_cast %350 : vector<8xf32> to vector<8x1xf32>
    %352 = vector.broadcast %351 : vector<8x1xf32> to vector<8x8xf32>
    %353 = arith.subf %349, %352 : vector<8x8xf32>
    %354 = math.exp %353 : vector<8x8xf32>
    %cst_110 = arith.constant dense<0.000000e+00> : vector<8xf32>
    %355 = vector.multi_reduction <add>, %354, %cst_110 [1] : vector<8x8xf32> to vector<8xf32>
    %356 = vector.shape_cast %355 : vector<8xf32> to vector<8x1xf32>
    %357 = tpu.reciprocal %356 : vector<8x1xf32> -> vector<8x1xf32>
    %358 = vector.broadcast %357 : vector<8x1xf32> to vector<8x8xf32>
    %359 = arith.mulf %354, %358 : vector<8x8xf32>
    %360 = arith.addf %343, %359 : vector<8x8xf32>
    %361 = vector.extract_strided_slice %327 {offsets = [0, 8], sizes = [8, 8], strides = [1, 1]} : vector<8x32xf32> to vector<8x8xf32>
    %cst_111 = arith.constant dense<0.000000e+00> : vector<8x8xf32>
    %362 = tpu.matmul %359, %361, %cst_111 {dimension_numbers = #tpu.dot_dimension_numbers<[1], [0], [0], [1], [0, 0, 1, 1], [], []>} : vector<8x8xf32>, vector<8x8xf32>, vector<8x8xf32> -> vector<8x8xf32>
    %363 = vector.extract_strided_slice %325 {offsets = [0, 16], sizes = [8, 8], strides = [1, 1]} : vector<8x32xf32> to vector<8x8xf32>
    %364 = vector.extract_strided_slice %326 {offsets = [0, 16], sizes = [8, 8], strides = [1, 1]} : vector<8x32xf32> to vector<8x8xf32>
    %365 = tpu.transpose %364, [1, 0] : vector<8x8xf32> -> vector<8x8xf32>
    %cst_112 = arith.constant dense<0.000000e+00> : vector<8x8xf32>
    %366 = tpu.matmul %363, %365, %cst_112 {dimension_numbers = #tpu.dot_dimension_numbers<[1], [0], [0], [1], [0, 0, 1, 1], [], []>} : vector<8x8xf32>, vector<8x8xf32>, vector<8x8xf32> -> vector<8x8xf32>
    %cst_113 = arith.constant dense<0xFF800000> : vector<8xf32>
    %367 = vector.multi_reduction <maximumf>, %366, %cst_113 [1] : vector<8x8xf32> to vector<8xf32>
    %368 = vector.shape_cast %367 : vector<8xf32> to vector<8x1xf32>
    %369 = vector.broadcast %368 : vector<8x1xf32> to vector<8x8xf32>
    %370 = arith.subf %366, %369 : vector<8x8xf32>
    %371 = math.exp %370 : vector<8x8xf32>
    %cst_114 = arith.constant dense<0.000000e+00> : vector<8xf32>
    %372 = vector.multi_reduction <add>, %371, %cst_114 [1] : vector<8x8xf32> to vector<8xf32>
    %373 = vector.shape_cast %372 : vector<8xf32> to vector<8x1xf32>
    %374 = tpu.reciprocal %373 : vector<8x1xf32> -> vector<8x1xf32>
    %375 = vector.broadcast %374 : vector<8x1xf32> to vector<8x8xf32>
    %376 = arith.mulf %371, %375 : vector<8x8xf32>
    %377 = arith.addf %360, %376 : vector<8x8xf32>
    %378 = vector.extract_strided_slice %327 {offsets = [0, 16], sizes = [8, 8], strides = [1, 1]} : vector<8x32xf32> to vector<8x8xf32>
    %cst_115 = arith.constant dense<0.000000e+00> : vector<8x8xf32>
    %379 = tpu.matmul %376, %378, %cst_115 {dimension_numbers = #tpu.dot_dimension_numbers<[1], [0], [0], [1], [0, 0, 1, 1], [], []>} : vector<8x8xf32>, vector<8x8xf32>, vector<8x8xf32> -> vector<8x8xf32>
    %380 = vector.extract_strided_slice %325 {offsets = [0, 24], sizes = [8, 8], strides = [1, 1]} : vector<8x32xf32> to vector<8x8xf32>
    %381 = vector.extract_strided_slice %326 {offsets = [0, 24], sizes = [8, 8], strides = [1, 1]} : vector<8x32xf32> to vector<8x8xf32>
    %382 = tpu.transpose %381, [1, 0] : vector<8x8xf32> -> vector<8x8xf32>
    %cst_116 = arith.constant dense<0.000000e+00> : vector<8x8xf32>
    %383 = tpu.matmul %380, %382, %cst_116 {dimension_numbers = #tpu.dot_dimension_numbers<[1], [0], [0], [1], [0, 0, 1, 1], [], []>} : vector<8x8xf32>, vector<8x8xf32>, vector<8x8xf32> -> vector<8x8xf32>
    %cst_117 = arith.constant dense<0xFF800000> : vector<8xf32>
    %384 = vector.multi_reduction <maximumf>, %383, %cst_117 [1] : vector<8x8xf32> to vector<8xf32>
    %385 = vector.shape_cast %384 : vector<8xf32> to vector<8x1xf32>
    %386 = vector.broadcast %385 : vector<8x1xf32> to vector<8x8xf32>
    %387 = arith.subf %383, %386 : vector<8x8xf32>
    %388 = math.exp %387 : vector<8x8xf32>
    %cst_118 = arith.constant dense<0.000000e+00> : vector<8xf32>
    %389 = vector.multi_reduction <add>, %388, %cst_118 [1] : vector<8x8xf32> to vector<8xf32>
    %390 = vector.shape_cast %389 : vector<8xf32> to vector<8x1xf32>
    %391 = tpu.reciprocal %390 : vector<8x1xf32> -> vector<8x1xf32>
    %392 = vector.broadcast %391 : vector<8x1xf32> to vector<8x8xf32>
    %393 = arith.mulf %388, %392 : vector<8x8xf32>
    %394 = arith.addf %377, %393 : vector<8x8xf32>
    %395 = vector.extract_strided_slice %327 {offsets = [0, 24], sizes = [8, 8], strides = [1, 1]} : vector<8x32xf32> to vector<8x8xf32>
    %cst_119 = arith.constant dense<0.000000e+00> : vector<8x8xf32>
    %396 = tpu.matmul %393, %395, %cst_119 {dimension_numbers = #tpu.dot_dimension_numbers<[1], [0], [0], [1], [0, 0, 1, 1], [], []>} : vector<8x8xf32>, vector<8x8xf32>, vector<8x8xf32> -> vector<8x8xf32>
    %cst_120 = arith.constant 2.500000e-01 : f32
    %397 = vector.broadcast %cst_120 : f32 to vector<8x8xf32>
    %398 = arith.mulf %394, %397 : vector<8x8xf32>
    %c1_121 = arith.constant 1 : index
    %c1_122 = arith.constant 1 : index
    %c0_123 = arith.constant 0 : index
    %c0_124 = arith.constant 0 : index
    %399 = vector.load %arg9[%c1_121, %c1_122, %c0_123, %c0_124] : memref<2x2x8x8xf32, #tpu.memory_space<vmem>>, vector<1x1x8x8xf32>
    %400 = vector.shape_cast %399 : vector<1x1x8x8xf32> to vector<8x8xf32>
    %401 = vector.shape_cast %398 : vector<8x8xf32> to vector<1x1x8x8xf32>
    tpu.vector_store %arg9[%c1_121, %c1_122, %c0_123, %c0_124], %401 {strides = array<i32>} : memref<2x2x8x8xf32, #tpu.memory_space<vmem>>, vector<1x1x8x8xf32>,
    %402 = tpu.concatenate %345, %362, %379, %396 in 1 : vector<8x8xf32>, vector<8x8xf32>, vector<8x8xf32>, vector<8x8xf32> -> vector<8x32xf32>
    %403 = tpu.concatenate %324, %402 in 0 : vector<8x32xf32>, vector<8x32xf32> -> vector<16x32xf32>
    %cst_125 = arith.constant dense<0.000000e+00> : vector<16x32xf32>
    %404 = tpu.matmul %403, %3, %cst_125 {dimension_numbers = #tpu.dot_dimension_numbers<[1], [0], [0], [1], [0, 0, 1, 1], [], []>} : vector<16x32xf32>, vector<32x32xf32>, vector<16x32xf32> -> vector<16x32xf32>
    %405 = vector.broadcast %7 : vector<1x32xf32> to vector<16x32xf32>
    %406 = arith.addf %404, %405 : vector<16x32xf32>
    %407 = arith.addf %238, %406 : vector<16x32xf32>
    %cst_126 = arith.constant dense<0.000000e+00> : vector<16xf32>
    %408 = vector.multi_reduction <add>, %407, %cst_126 [1] : vector<16x32xf32> to vector<16xf32>
    %409 = vector.shape_cast %408 : vector<16xf32> to vector<16x1xf32>
    %cst_127 = arith.constant 3.200000e+01 : f32
    %410 = vector.broadcast %cst_127 : f32 to vector<16x1xf32>
    %411 = arith.divf %409, %410 : vector<16x1xf32>
    %412 = vector.broadcast %411 : vector<16x1xf32> to vector<16x32xf32>
    %413 = arith.subf %407, %412 : vector<16x32xf32>
    %414 = vector.broadcast %411 : vector<16x1xf32> to vector<16x32xf32>
    %415 = arith.subf %407, %414 : vector<16x32xf32>
    %416 = arith.mulf %413, %415 : vector<16x32xf32>
    %cst_128 = arith.constant dense<0.000000e+00> : vector<16xf32>
    %417 = vector.multi_reduction <add>, %416, %cst_128 [1] : vector<16x32xf32> to vector<16xf32>
    %418 = vector.shape_cast %417 : vector<16xf32> to vector<16x1xf32>
    %cst_129 = arith.constant 3.200000e+01 : f32
    %419 = vector.broadcast %cst_129 : f32 to vector<16x1xf32>
    %420 = arith.divf %418, %419 : vector<16x1xf32>
    %421 = vector.broadcast %411 : vector<16x1xf32> to vector<16x32xf32>
    %422 = arith.subf %407, %421 : vector<16x32xf32>
    %cst_130 = arith.constant 9.99999974E-6 : f32
    %423 = vector.broadcast %cst_130 : f32 to vector<16x1xf32>
    %424 = arith.addf %420, %423 : vector<16x1xf32>
    %425 = math.rsqrt %424 : vector<16x1xf32>
    %426 = vector.broadcast %425 : vector<16x1xf32> to vector<16x32xf32>
    %427 = arith.mulf %422, %426 : vector<16x32xf32>
    %428 = vector.broadcast %9 : vector<1x32xf32> to vector<16x32xf32>
    %429 = arith.mulf %427, %428 : vector<16x32xf32>
    %430 = vector.broadcast %10 : vector<1x32xf32> to vector<16x32xf32>
    %431 = arith.addf %429, %430 : vector<16x32xf32>
    %cst_131 = arith.constant dense<0.000000e+00> : vector<16x64xf32>
    %432 = tpu.matmul %431, %4, %cst_131 {dimension_numbers = #tpu.dot_dimension_numbers<[1], [0], [0], [1], [0, 0, 1, 1], [], []>} : vector<16x32xf32>, vector<32x64xf32>, vector<16x64xf32> -> vector<16x64xf32>
    %433 = vector.broadcast %5 : vector<1x64xf32> to vector<16x64xf32>
    %434 = arith.addf %432, %433 : vector<16x64xf32>
    %cst_132 = arith.constant 0.000000e+00 : f32
    %435 = vector.broadcast %cst_132 : f32 to vector<16x64xf32>
    %436 = arith.maximumf %434, %435 : vector<16x64xf32>
    %cst_133 = arith.constant dense<0.000000e+00> : vector<16x32xf32>
    %437 = tpu.matmul %436, %6, %cst_133 {dimension_numbers = #tpu.dot_dimension_numbers<[1], [0], [0], [1], [0, 0, 1, 1], [], []>} : vector<16x64xf32>, vector<64x32xf32>, vector<16x32xf32> -> vector<16x32xf32>
    %438 = vector.broadcast %8 : vector<1x32xf32> to vector<16x32xf32>
    %439 = arith.addf %437, %438 : vector<16x32xf32>
    %440 = arith.addf %431, %439 : vector<16x32xf32>
    %cst_134 = arith.constant dense<0.000000e+00> : vector<16xf32>
    %441 = vector.multi_reduction <add>, %440, %cst_134 [1] : vector<16x32xf32> to vector<16xf32>
    %442 = vector.shape_cast %441 : vector<16xf32> to vector<16x1xf32>
    %cst_135 = arith.constant 3.200000e+01 : f32
    %443 = vector.broadcast %cst_135 : f32 to vector<16x1xf32>
    %444 = arith.divf %442, %443 : vector<16x1xf32>
    %445 = vector.broadcast %444 : vector<16x1xf32> to vector<16x32xf32>
    %446 = arith.subf %440, %445 : vector<16x32xf32>
    %447 = vector.broadcast %444 : vector<16x1xf32> to vector<16x32xf32>
    %448 = arith.subf %440, %447 : vector<16x32xf32>
    %449 = arith.mulf %446, %448 : vector<16x32xf32>
    %cst_136 = arith.constant dense<0.000000e+00> : vector<16xf32>
    %450 = vector.multi_reduction <add>, %449, %cst_136 [1] : vector<16x32xf32> to vector<16xf32>
    %451 = vector.shape_cast %450 : vector<16xf32> to vector<16x1xf32>
    %cst_137 = arith.constant 3.200000e+01 : f32
    %452 = vector.broadcast %cst_137 : f32 to vector<16x1xf32>
    %453 = arith.divf %451, %452 : vector<16x1xf32>
    %454 = vector.broadcast %444 : vector<16x1xf32> to vector<16x32xf32>
    %455 = arith.subf %440, %454 : vector<16x32xf32>
    %cst_138 = arith.constant 9.99999974E-6 : f32
    %456 = vector.broadcast %cst_138 : f32 to vector<16x1xf32>
    %457 = arith.addf %453, %456 : vector<16x1xf32>
    %458 = math.rsqrt %457 : vector<16x1xf32>
    %459 = vector.broadcast %458 : vector<16x1xf32> to vector<16x32xf32>
    %460 = arith.mulf %455, %459 : vector<16x32xf32>
    %461 = vector.broadcast %11 : vector<1x32xf32> to vector<16x32xf32>
    %462 = arith.mulf %460, %461 : vector<16x32xf32>
    %463 = vector.broadcast %12 : vector<1x32xf32> to vector<16x32xf32>
    %464 = arith.addf %462, %463 : vector<16x32xf32>
    %c0_139 = arith.constant 0 : index
    %c0_140 = arith.constant 0 : index
    %465 = vector.load %arg8[%c0_139, %c0_140] : memref<16x32xf32, #tpu.memory_space<vmem>>, vector<16x32xf32>
    tpu.vector_store %arg8[%c0_139, %c0_140], %464 {strides = array<i32>} : memref<16x32xf32, #tpu.memory_space<vmem>>, vector<16x32xf32>,
    return
  }
}

</mosaic_0001>

<bundles_post_ra>
// kernel: transformer_encoder_with_attn.1
= control target key start
LH: loop header
LB: loop body
LE: loop exit
PB: predicated region body
PF: predicated region fallthrough
CT: control target
= control target key end

     0   :  { %s2762_s0 = inlined_call_operand.vmem [shape: f32[16,32], index: 0, kind: input, shape index: {}]   ;;  %s2763_s1 = inlined_call_operand.vmem [shape: f32[32,96], index: 1, kind: input, shape index: {}]   ;;  %s2764_s2 = inlined_call_operand.vmem [shape: f32[1,96], index: 2, kind: input, shape index: {}]   ;;  %s2765_s3 = inlined_call_operand.vmem [shape: f32[32,32], index: 3, kind: input, shape index: {}]   ;;  %s2766_s4 = inlined_call_operand.vmem [shape: f32[32,64], index: 4, kind: input, shape index: {}]   ;;  %s2767_s5 = inlined_call_operand.vmem [shape: f32[1,64], index: 5, kind: input, shape index: {}]   ;;  %s2768_s6 = inlined_call_operand.vmem [shape: f32[64,32], index: 6, kind: input, shape index: {}]   ;;  %s2769_s7 = inlined_call_operand.vmem [shape: f32[6,32], index: 7, kind: input, shape index: {}]   ;;  %s2770_s8 = inlined_call_operand.hbm [shape: f32[16,32], index: 8, kind: output, shape index: {0}]   ;;  %s2771_s9 = inlined_call_operand.vmem [shape: f32[2,2,8,8], index: 9, kind: output, shape index: {1}]  }
   0x1   :  { %v2163_v0 = vld [vmem:[%s2763_s1 + $0x18] sm:$0xff]  ;;  %v2168_v1 = vld [vmem:[%s2763_s1 + $0x10] sm:$0xff]  ;;  %v2174_v2 = vld [vmem:[%s2763_s1 + $0x8] sm:$0xff] }
   0x2   :  { %84 = vmatpush.msra.mxu0 %v2163_v0  ;;  %v2179_v3 = vld [vmem:[%s2763_s1] sm:$0xff] }
   0x4   :  { %85 = vmatpush.msra.mxu0 %v2168_v1 }
   0x5   :  { %15 = vsyncpa [#allocation3], 0  ;;  %v2186_v4 = vld [vmem:[%s2762_s0] sm:$0xff]  ;;  %vm65_vm0 = vcmask 261120   ;;  %s2093_s1 = smov 64   ;;  %s2094_s21 = smov 96  }
   0x6   :  { %86 = vmatpush.msra.mxu0 %v2174_v2  ;;  %v2194_v5 = vld [vmem:[%s2764_s2] ss:$0 sm:$0xff]  ;;  %s2095_s22 = smov 120   ;;  %s2096_s23 = smov 56   ;;  %vm100_vm1 = vcmask 64512   ;;  %v2227_v30 = vld [vmem:[%s2762_s0 + $0x8] sm:$0xff] }
   0x7   :  { %s2097_s24 = smov 88   ;;  %s2098_s25 = smov 72  }
   0x8   :  { %87 = vmatpush.msra.mxu0 %v2179_v3  ;;  %s2099_s26 = smov 80   ;;  %s2100_s27 = smov 112  }
   0x9   :  { %1885 = vmatmul.msk.f32.vlgmr.msra.gmra.mxu0 %vm65_vm0, %v2186_v4  ;;  %s2101_s28 = smov 104   ;;  %s2102_s0 = smov 48  }
   0xa   :  { %s2103_s10 = smov 40   ;;  %s2104_s11 = smov 8  }
   0xb   :  { %s2105_s14 = smov 16   ;;  %s2106_s15 = smov 24  }
   0xc   :  { %s2109_s17 = smov 128  }
  0x11   :  { %1886 = vmatmul.msk.f32.gmra.mxu0 %vm65_vm0, %v2227_v30 }
  0x86   :  { %v89_v6 = vpop.f32.mrf.mxu0 }
  0x87   :  { %v2197_v7 = vadd.f32 %v2194_v5, %v89_v6 }
  0x89   :  { %151 = vrot.lane.b32.xlu2 %v2197_v7, %s2093_s1  ;;  %98 = vrot.lane.b32.xlu0 %v2197_v7, %s2094_s21  ;;  %v95_v8 = vmul.f32 0.35355338, %v2197_v7 }
  0x8b   :  { %177 = vrot.lane.b32.xlu1 %v95_v8, %s2095_s22 }
  0x8e   :  { %v92_v62 = vpop.f32.mrf.mxu0 }
  0x8f   :  { %v2244_v63 = vadd.f32 %v2194_v5, %v92_v62 }
  0x91   :  { %230 = vrot.lane.b32.xlu2 %v2197_v7, %s2096_s23  ;;  %179 = vrot.lane.b32.xlu0 %v2197_v7, %s2097_s24 }
  0xe3   :  { %v152_v9 = vpop.permute.xlu2 %151 }
  0xe4   :  { %172 = vmatpush.msra.mxu2 %v152_v9  ;;  %v96_v9 = vmul.f32 0.35355338, %v2244_v63 }
  0xeb   :  { %v231_v10 = vpop.permute.xlu2 %230 }
  0xec   :  { %251 = vmatpush.msrb.mxu2 %v231_v10 }
  0xfb   :  { %v99_v11 = vpop.permute.xlu0 %98 }
  0xfc   :  { %1887 = vmatpush.xpose.msk.msra.mxu3 %vm100_vm1, %v99_v11 }
  0xfd   :  { %v178_v13 = vpop.permute.xlu1 %177 }
  0xff   :  { %1888 = vmatmul.msk.f32.vlgmr.msra.gmra.mxu3 %vm100_vm1, %v95_v8 }
 0x103   :  { %v180_v12 = vpop.permute.xlu0 %179 }
 0x104   :  { %1890 = vmatpush.xpose.msk.msrb.mxu3 %vm100_vm1, %v180_v12 }
 0x107   :  { %1891 = vmatmul.msk.f32.vlgmr.msrb.gmra.mxu3 %vm100_vm1, %v178_v13 }
 0x182   :  { %v123_v14 = vpop.f32.mrf.mxu3 }
 0x183   :  { %v126_v15 = vsel %vm100_vm1, %v123_v14, -inf }
 0x184   :  { %127 = vmax.xlane.f32.xlu1 %v126_v15 }
 0x18a   :  { %v202_v16 = vpop.f32.mrf.mxu3 }
 0x18b   :  { %v205_v17 = vsel %vm100_vm1, %v202_v16, -inf }
 0x18c   :  { %206 = vmax.xlane.f32.xlu2 %v205_v17 }
 0x19d   :  { %337 = vrot.lane.b32.xlu1 %v2197_v7, %s2098_s25 }
 0x1a4   :  { %258 = vrot.lane.b32.xlu2 %v2197_v7, %s2099_s26 }
 0x1f7   :  { %v128_v18 = vpop.xlane.xlu1 %127 }
 0x1f8   :  { %v129_v19 = vsub.f32 %v123_v14, %v128_v18 }
 0x1fa   :  { %v130_v20 = vmul.f32 1.442695, %v129_v19 }
 0x1fc   :  { %1977 = vpow2.f32 %v130_v20 }
 0x1ff   :  { %v207_v21 = vpop.xlane.xlu2 %206 }
 0x200   :  { %v208_v22 = vsub.f32 %v202_v16, %v207_v21 }
 0x202   :  { %v1978_v23 = vpop.eup %1977  ;;  %v209_v24 = vmul.f32 1.442695, %v208_v22 }
 0x203   :  { %v132_v25 = vsel %vm100_vm1, %v1978_v23, 0.0 }
 0x204   :  { %1979 = vpow2.f32 %v209_v24  ;;  %133 = vadd.xlane.f32.xlu2 %v132_v25 }
 0x207   :  { %v259_v26 = vpop.permute.xlu2 %258 }
 0x208   :  { %1893 = vmatpush.xpose.msk.msra.mxu1 %vm100_vm1, %v259_v26 }
 0x20a   :  { %v1980_v27 = vpop.eup %1979 }
 0x20b   :  { %v211_v28 = vsel %vm100_vm1, %v1980_v27, 0.0 }
 0x20c   :  { %212 = vadd.xlane.f32.xlu0 %v211_v28 }
 0x20f   :  { %v338_v48 = vpop.permute.xlu1 %337 }
 0x21c   :  { %256 = vrot.lane.b32.xlu2 %v95_v8, %s2100_s27 }
 0x220   :  { %335 = vrot.lane.b32.xlu0 %v95_v8, %s2101_s28 }
 0x277   :  { %v134_v29 = vpop.xlane.xlu2 %133 }
 0x278   :  { %1981 = vrcp.f32 %v134_v29  ;;  %v146_v36 = vand.u32 2147483648, %v134_v29  ;;  %v144_v38 = vand.u32 2147483647, %v134_v29  ;;  %vm140_vm3 = vweird.f32 %v134_v29 }
 0x27a   :  { %v147_v41 = vor.u32 1.1754944e-38, %v146_v36  ;;  %vm145_vm5 = vcmp.eq.f32.partialorder %v144_v38, 8.507059e+37 }
 0x27e   :  { %v1982_v31 = vpop.eup %1981 }
 0x27f   :  { %v136_v32 = vmul.f32 %v1982_v31, %v134_v29  ;;  %v213_v33 = vpop.xlane.xlu0 %212  ;;  %v257_v34 = vpop.permute.xlu2 %256  ;;  %vm141_vm2 = vweird.f32 %v1982_v31 }
 0x280   :  { %1983 = vrcp.f32 %v213_v33  ;;  %1894 = vmatmul.msk.f32.vlgmr.msra.gmra.mxu1 %vm100_vm1, %v257_v34  ;;  %vm142_vm4 = vmor %vm140_vm3, %vm141_vm2  ;;  %v225_v47 = vand.u32 2147483648, %v213_v33  ;;  %v223_v50 = vand.u32 2147483647, %v213_v33  ;;  %vm219_vm7 = vweird.f32 %v213_v33 }
 0x281   :  { %v137_v35 = vsub.f32 1.0, %v136_v32 }
 0x282   :  { %v226_v52 = vor.u32 1.1754944e-38, %v225_v47  ;;  %vm224_vm9 = vcmp.eq.f32.partialorder %v223_v50, 8.507059e+37 }
 0x283   :  { %v138_v37 = vmul.f32 %v1982_v31, %v137_v35 }
 0x285   :  { %v139_v39 = vadd.f32 %v1982_v31, %v138_v37 }
 0x286   :  { %v1984_v40 = vpop.eup %1983 }
 0x287   :  { %v215_v42 = vmul.f32 %v1984_v40, %v213_v33  ;;  %v143_v43 = vsel %vm142_vm4, %v1982_v31, %v139_v39  ;;  %vm220_vm6 = vweird.f32 %v1984_v40  ;;  %vm429_vm4 = vcmask 130048  }
 0x288   :  { %v148_v44 = vsel %vm145_vm5, %v147_v41, %v143_v43  ;;  %vm221_vm8 = vmor %vm219_vm7, %vm220_vm6  ;;  %vm431_vm5 = vcmask 195584  }
 0x289   :  { %v216_v45 = vsub.f32 1.0, %v215_v42  ;;  %v149_v46 = vmul.f32 %v1978_v23, %v148_v44 }
 0x28b   :  { %v217_v49 = vmul.f32 %v1984_v40, %v216_v45  ;;  %1889 = vmatmul.msk.f32.vlgmr.msra.gmra.mxu2 %vm100_vm1, %v149_v46 }
 0x28c   :  { %1896 = vmatpush.xpose.msk.msra.mxu2 %vm100_vm1, %v338_v48 }
 0x28d   :  { %v218_v51 = vadd.f32 %v1984_v40, %v217_v49 }
 0x28f   :  { %v222_v53 = vsel %vm221_vm8, %v1984_v40, %v218_v51 }
 0x290   :  { %v227_v54 = vsel %vm224_vm9, %v226_v52, %v222_v53 }
 0x291   :  { %v228_v55 = vmul.f32 %v1980_v27, %v227_v54 }
 0x292   :  { %v336_v57 = vpop.permute.xlu0 %335 }
 0x293   :  { %v2234_v56 = vadd.f32 %v228_v55, %v149_v46  ;;  %1892 = vmatmul.msk.f32.vlgmr.msrb.gmra.mxu2 %vm100_vm1, %v228_v55 }
 0x29b   :  { %1897 = vmatmul.msk.f32.vlgmr.msra.gmra.mxu2 %vm100_vm1, %v336_v57 }
 0x2fd   :  { %v281_v58 = vpop.f32.mrf.mxu1 }
 0x2fe   :  { %v284_v59 = vsel %vm100_vm1, %v281_v58, -inf }
 0x2ff   :  { %285 = vmax.xlane.f32.xlu2 %v284_v59 }
 0x30e   :  { %v2239_v60 = vpop.f32.mrf.mxu2 }
 0x316   :  { %v253_v61 = vpop.f32.mrf.mxu2 }
 0x317   :  { %309 = vrot.lane.b32.xlu2 %v2197_v7, %s2102_s0 }
 0x31e   :  { %v360_v6 = vpop.f32.mrf.mxu2 }
 0x31f   :  { %v363_v8 = vsel %vm100_vm1, %v360_v6, -inf  ;;  %514 = vrot.lane.b32.xlu2 %v2244_v63, %s2097_s24 }
 0x320   :  { %364 = vmax.xlane.f32.xlu1 %v363_v8 }
 0x339   :  { %388 = vrot.lane.b32.xlu1 %v2197_v7, %s2103_s10 }
 0x341   :  { %593 = vrot.lane.b32.xlu1 %v2244_v63, %s2099_s26 }
 0x349   :  { %670 = vrot.lane.b32.xlu1 %v96_v9, %s2101_s28 }
 0x372   :  { %v286_v10 = vpop.xlane.xlu2 %285 }
 0x373   :  { %v287_v11 = vsub.f32 %v281_v58, %v286_v10 }
 0x375   :  { %v288_v12 = vmul.f32 1.442695, %v287_v11  ;;  %v2288_v11 = vld [vmem:[%s2765_s3 + $0x18] sm:$0xff] }
 0x377   :  { %1985 = vpow2.f32 %v288_v12  ;;  %v2294_v12 = vld [vmem:[%s2765_s3 + $0x10] sm:$0xff] }
 0x37a   :  { %v310_v13 = vpop.permute.xlu2 %309 }
 0x37b   :  { %330 = vmatpush.msra.mxu3 %v310_v13  ;;  %v2299_v13 = vld [vmem:[%s2765_s3 + $0x8] sm:$0xff] }
 0x37d   :  { %v1986_v14 = vpop.eup %1985 }
 0x37e   :  { %v290_v15 = vsel %vm100_vm1, %v1986_v14, 0.0 }
 0x37f   :  { %291 = vadd.xlane.f32.xlu0 %v290_v15 }
 0x382   :  { %v515_v20 = vpop.permute.xlu2 %514 }
 0x383   :  { %1902 = vmatpush.xpose.msk.msrb.mxu2 %vm100_vm1, %v515_v20 }
 0x393   :  { %434 = vrot.lane.b32.xlu0 %v2244_v63, %s2094_s21  ;;  %v365_v7 = vpop.xlane.xlu1 %364 }
 0x394   :  { %v366_v16 = vsub.f32 %v360_v6, %v365_v7 }
 0x396   :  { %v367_v17 = vmul.f32 1.442695, %v366_v16 }
 0x398   :  { %1987 = vpow2.f32 %v367_v17 }
 0x39b   :  { %512 = vrot.lane.b32.xlu0 %v96_v9, %s2095_s22 }
 0x39e   :  { %v1988_v18 = vpop.eup %1987 }
 0x39f   :  { %v369_v19 = vsel %vm100_vm1, %v1988_v18, 0.0 }
 0x3a0   :  { %370 = vadd.xlane.f32.xlu2 %v369_v19 }
 0x3a3   :  { %591 = vrot.lane.b32.xlu0 %v96_v9, %s2100_s27 }
 0x3ab   :  { %v389_v21 = vpop.permute.xlu1 %388 }
 0x3ac   :  { %409 = vmatpush.msrb.mxu1 %v389_v21 }
 0x3b3   :  { %v594_v36 = vpop.permute.xlu1 %593 }
 0x3b8   :  { %672 = vrot.lane.b32.xlu2 %v2244_v63, %s2098_s25 }
 0x3bb   :  { %v671_v44 = vpop.permute.xlu1 %670 }
 0x3c0   :  { %417 = vrot.lane.b32.xlu2 %v253_v61, %s2104_s11 }
 0x3f2   :  { %v292_v22 = vpop.xlane.xlu0 %291 }
 0x3f3   :  { %1989 = vrcp.f32 %v292_v22  ;;  %v304_v26 = vand.u32 2147483648, %v292_v22  ;;  %v302_v28 = vand.u32 2147483647, %v292_v22  ;;  %vm298_vm11 = vweird.f32 %v292_v22 }
 0x3f5   :  { %v305_v31 = vor.u32 1.1754944e-38, %v304_v26  ;;  %vm303_vm13 = vcmp.eq.f32.partialorder %v302_v28, 8.507059e+37 }
 0x3f9   :  { %v1990_v23 = vpop.eup %1989 }
 0x3fa   :  { %v294_v24 = vmul.f32 %v1990_v23, %v292_v22  ;;  %vm299_vm10 = vweird.f32 %v1990_v23 }
 0x3fb   :  { %vm300_vm12 = vmor %vm298_vm11, %vm299_vm10 }
 0x3fc   :  { %v295_v25 = vsub.f32 1.0, %v294_v24 }
 0x3fe   :  { %v296_v27 = vmul.f32 %v1990_v23, %v295_v25 }
 0x400   :  { %v297_v29 = vadd.f32 %v1990_v23, %v296_v27 }
 0x402   :  { %v301_v32 = vsel %vm300_vm12, %v1990_v23, %v297_v29 }
 0x403   :  { %v306_v33 = vsel %vm303_vm13, %v305_v31, %v301_v32 }
 0x404   :  { %v307_v34 = vmul.f32 %v1986_v14, %v306_v33  ;;  %v2306_v14 = vld [vmem:[%s2765_s3] sm:$0xff]  ;;  %s1869_s3 = sshll.u32 %s2770_s8, 4  ;;  %s1870_s3 = int_to_ptr.hbm [resolvable:$true] %s1869_s3 }
 0x405   :  { %v435_v35 = vpop.permute.xlu0 %434 }
 0x406   :  { %1895 = vmatmul.msk.f32.vlgmr.msra.gmra.mxu3 %vm100_vm1, %v307_v34  ;;  %v308_v52 = vadd.f32 %v307_v34, %v2234_v56 }
 0x407   :  { %1899 = vmatpush.xpose.msk.msrb.mxu3 %vm100_vm1, %v435_v35 }
 0x40b   :  { %1905 = vmatpush.xpose.msk.msra.mxu3 %vm100_vm1, %v594_v36 }
 0x40d   :  { %v513_v37 = vpop.permute.xlu0 %512 }
 0x40e   :  { %1900 = vmatmul.msk.f32.vlgmr.msrb.gmra.mxu3 %vm100_vm1, %v96_v9  ;;  %1903 = vmatmul.msk.f32.vlgmr.msrb.gmra.mxu2 %vm100_vm1, %v513_v37 }
 0x40f   :  { %786 = vmatpush.msrb.mxu3 %v2288_v11 }
 0x411   :  { %787 = vmatpush.msrb.mxu3 %v2294_v12 }
 0x413   :  { %v371_v38 = vpop.xlane.xlu2 %370  ;;  %788 = vmatpush.msrb.mxu3 %v2299_v13 }
 0x414   :  { %1991 = vrcp.f32 %v371_v38  ;;  %v383_v45 = vand.u32 2147483648, %v371_v38  ;;  %v381_v47 = vand.u32 2147483647, %v371_v38  ;;  %vm377_vm15 = vweird.f32 %v371_v38 }
 0x415   :  { %v592_v39 = vpop.permute.xlu0 %591  ;;  %789 = vmatpush.msrb.mxu3 %v2306_v14 }
 0x416   :  { %1906 = vmatmul.msk.f32.vlgmr.msra.gmra.mxu3 %vm100_vm1, %v592_v39  ;;  %v384_v49 = vor.u32 1.1754944e-38, %v383_v45  ;;  %vm382_vm3 = vcmp.eq.f32.partialorder %v381_v47, 8.507059e+37 }
 0x41a   :  { %v1992_v40 = vpop.eup %1991 }
 0x41b   :  { %v373_v41 = vmul.f32 %v1992_v40, %v371_v38  ;;  %v673_v42 = vpop.permute.xlu2 %672  ;;  %vm378_vm14 = vweird.f32 %v1992_v40 }
 0x41c   :  { %1908 = vmatpush.xpose.msk.msra.mxu2 %vm100_vm1, %v673_v42  ;;  %vm379_vm2 = vmor %vm377_vm15, %vm378_vm14 }
 0x41d   :  { %v374_v43 = vsub.f32 1.0, %v373_v41 }
 0x41f   :  { %v375_v46 = vmul.f32 %v1992_v40, %v374_v43  ;;  %1909 = vmatmul.msk.f32.vlgmr.msra.gmra.mxu2 %vm100_vm1, %v671_v44 }
 0x421   :  { %v376_v48 = vadd.f32 %v1992_v40, %v375_v46 }
 0x423   :  { %v380_v50 = vsel %vm379_vm2, %v1992_v40, %v376_v48  ;;  %v418_v15 = vpop.permute.xlu2 %417  ;;  %v2341_v40 = vld [vmem:[%s2769_s7] ss:$0 sm:$0xff] }
 0x424   :  { %v385_v51 = vsel %vm382_vm3, %v384_v49, %v380_v50  ;;  %v428_v21 = vsel %vm100_vm1, %v2239_v60, %v418_v15 }
 0x425   :  { %v386_v53 = vmul.f32 %v1988_v18, %v385_v51 }
 0x427   :  { %v387_v54 = vadd.f32 %v386_v53, %v308_v52  ;;  %1898 = vmatmul.msk.f32.vlgmr.msrb.gmra.mxu1 %vm100_vm1, %v386_v53 }
 0x429   :  { %v414_v55 = vmul.f32 0.25, %v387_v54 }
 0x42b   :  { %415 = vst.msk [vmem:[%s2771_s9] sm:$0xff] %vm100_vm1, %v414_v55 }
 0x489   :  { %v332_v57 = vpop.f32.mrf.mxu3 }
 0x48a   :  { %421 = vrot.lane.b32.xlu0 %v332_v57, %s2105_s14 }
 0x491   :  { %v458_v58 = vpop.f32.mrf.mxu3  ;;  %v537_v61 = vpop.f32.mrf.mxu2 }
 0x492   :  { %v461_v59 = vsel %vm100_vm1, %v458_v58, -inf  ;;  %v540_v8 = vsel %vm100_vm1, %v537_v61, -inf }
 0x493   :  { %462 = vmax.xlane.f32.xlu2 %v461_v59 }
 0x499   :  { %v616_v9 = vpop.f32.mrf.mxu3 }
 0x49a   :  { %v619_v10 = vsel %vm100_vm1, %v616_v9, -inf }
 0x4a2   :  { %v695_v56 = vpop.f32.mrf.mxu2 }
 0x4a3   :  { %v698_v62 = vsel %vm100_vm1, %v695_v56, -inf }
 0x4a4   :  { %v411_v6 = vpop.f32.mrf.mxu1  ;;  %699 = vmax.xlane.f32.xlu2 %v698_v62 }
 0x4a5   :  { %425 = vrot.lane.b32.xlu1 %v411_v6, %s2106_s15 }
 0x4b4   :  { %541 = vmax.xlane.f32.xlu0 %v540_v8 }
 0x4cf   :  { %620 = vmax.xlane.f32.xlu1 %v619_v10 }
 0x4fc   :  { %v422_v20 = vpop.permute.xlu0 %421 }
 0x4fd   :  { %v430_v22 = vsel %vm429_vm4, %v428_v21, %v422_v20 }
 0x506   :  { %v463_v7 = vpop.xlane.xlu2 %462 }
 0x507   :  { %v464_v16 = vsub.f32 %v458_v58, %v463_v7 }
 0x509   :  { %v465_v17 = vmul.f32 1.442695, %v464_v16 }
 0x50b   :  { %1993 = vpow2.f32 %v465_v17 }
 0x511   :  { %v2309_v18 = vpop.eup %1993 }
 0x512   :  { %v467_v19 = vsel %vm100_vm1, %v2309_v18, 0.0 }
 0x513   :  { %468 = vadd.xlane.f32.xlu0 %v467_v19 }
 0x517   :  { %v700_v23 = vpop.xlane.xlu2 %699  ;;  %v426_v24 = vpop.permute.xlu1 %425 }
 0x518   :  { %v701_v25 = vsub.f32 %v695_v56, %v700_v23  ;;  %v432_v26 = vsel %vm431_vm5, %v430_v22, %v426_v24 }
 0x519   :  { %1912 = vmatmul.msk.f32.vlgmr.msrb.gmra.mxu3 %vm65_vm0, %v432_v26 }
 0x51a   :  { %v702_v27 = vmul.f32 1.442695, %v701_v25 }
 0x51c   :  { %1995 = vpow2.f32 %v702_v27 }
 0x522   :  { %v2318_v28 = vpop.eup %1995 }
 0x523   :  { %v704_v29 = vsel %vm100_vm1, %v2318_v28, 0.0 }
 0x524   :  { %705 = vadd.xlane.f32.xlu0 %v704_v29 }
 0x527   :  { %v542_v31 = vpop.xlane.xlu0 %541 }
 0x528   :  { %v543_v32 = vsub.f32 %v537_v61, %v542_v31 }
 0x52a   :  { %v544_v60 = vmul.f32 1.442695, %v543_v32 }
 0x52c   :  { %1997 = vpow2.f32 %v544_v60 }
 0x532   :  { %v2322_v33 = vpop.eup %1997 }
 0x533   :  { %v546_v34 = vsel %vm100_vm1, %v2322_v33, 0.0 }
 0x534   :  { %547 = vadd.xlane.f32.xlu1 %v546_v34 }
 0x538   :  { %644 = vrot.lane.b32.xlu0 %v2244_v63, %s2102_s0 }
 0x542   :  { %v621_v35 = vpop.xlane.xlu1 %620 }
 0x543   :  { %v622_v36 = vsub.f32 %v616_v9, %v621_v35 }
 0x545   :  { %v623_v37 = vmul.f32 1.442695, %v622_v36 }
 0x547   :  { %1999 = vpow2.f32 %v623_v37 }
 0x54d   :  { %v2328_v38 = vpop.eup %1999  ;;  %486 = vrot.lane.b32.xlu1 %v2244_v63, %s2093_s1 }
 0x54e   :  { %v625_v39 = vsel %vm100_vm1, %v2328_v38, 0.0 }
 0x54f   :  { %626 = vadd.xlane.f32.xlu2 %v625_v39 }
 0x555   :  { %723 = vrot.lane.b32.xlu1 %v2244_v63, %s2103_s10 }
 0x567   :  { %565 = vrot.lane.b32.xlu2 %v2244_v63, %s2096_s23 }
 0x586   :  { %v469_v42 = vpop.xlane.xlu0 %468 }
 0x587   :  { %2001 = vrcp.f32 %v469_v42  ;;  %v481_v54 = vand.u32 2147483648, %v469_v42  ;;  %vm475_vm7 = vweird.f32 %v469_v42 }
 0x589   :  { %v482_v59 = vor.u32 1.1754944e-38, %v481_v54 }
 0x58d   :  { %v2002_v46 = vpop.eup %2001 }
 0x58e   :  { %v471_v63 = vmul.f32 %v2002_v46, %v469_v42  ;;  %vm476_vm6 = vweird.f32 %v2002_v46 }
 0x58f   :  { %vm477_vm8 = vmor %vm475_vm7, %vm476_vm6 }
 0x590   :  { %v472_v48 = vsub.f32 1.0, %v471_v63 }
 0x592   :  { %v473_v51 = vmul.f32 %v2002_v46, %v472_v48 }
 0x594   :  { %v474_v53 = vadd.f32 %v2002_v46, %v473_v51 }
 0x596   :  { %v478_v58 = vsel %vm477_vm8, %v2002_v46, %v474_v53 }
 0x597   :  { %v706_v49 = vpop.xlane.xlu0 %705 }
 0x598   :  { %v718_v24 = vand.u32 2147483648, %v706_v49  ;;  %vm712_vm15 = vweird.f32 %v706_v49  ;;  %v716_v25 = vand.u32 2147483647, %v706_v49 }
 0x59a   :  { %v719_v34 = vor.u32 1.1754944e-38, %v718_v24  ;;  %vm717_vm3 = vcmp.eq.f32.partialorder %v716_v25, 8.507059e+37  ;;  %v2414_v25 = vld [vmem:[%s2768_s6 + $0x38] sm:$0xff] }
 0x59b   :  { %906 = vmatpush.msrb.mxu2 %v2414_v25 }
 0x59c   :  { %v791_v41 = vpop.f32.mrf.mxu3 }
 0x59d   :  { %v792_v43 = vadd.f32 %v2341_v40, %v791_v41 }
 0x59f   :  { %v2345_v44 = vadd.f32 %v792_v43, %v2186_v4  ;;  %v479_v4 = vand.u32 2147483647, %v469_v42 }
 0x5a1   :  { %v799_v45 = vsel %vm65_vm0, %v2345_v44, 0.0  ;;  %vm480_vm9 = vcmp.eq.f32.partialorder %v479_v4, 8.507059e+37 }
 0x5a2   :  { %800 = vadd.xlane.f32.xlu0 %v799_v45  ;;  %v483_v62 = vsel %vm480_vm9, %v482_v59, %v478_v58 }
 0x5a3   :  { %v484_v8 = vmul.f32 %v2309_v18, %v483_v62  ;;  %v2393_v62 = vld [vmem:[%s2766_s4] sm:$0xff] }
 0x5a7   :  { %v548_v47 = vpop.xlane.xlu1 %547 }
 0x5a8   :  { %2003 = vrcp.f32 %v548_v47  ;;  %v560_v15 = vand.u32 2147483648, %v548_v47  ;;  %vm554_vm11 = vweird.f32 %v548_v47  ;;  %v558_v16 = vand.u32 2147483647, %v548_v47 }
 0x5a9   :  { %2005 = vrcp.f32 %v706_v49 }
 0x5aa   :  { %v645_v7 = vpop.permute.xlu0 %644  ;;  %v561_v21 = vor.u32 1.1754944e-38, %v560_v15  ;;  %vm559_vm13 = vcmp.eq.f32.partialorder %v558_v16, 8.507059e+37 }
 0x5ae   :  { %v2004_v50 = vpop.eup %2003 }
 0x5af   :  { %v550_v52 = vmul.f32 %v2004_v50, %v548_v47  ;;  %v2006_v57 = vpop.eup %2005  ;;  %vm555_vm10 = vweird.f32 %v2004_v50 }
 0x5b0   :  { %v708_v61 = vmul.f32 %v2006_v57, %v706_v49  ;;  %vm556_vm12 = vmor %vm554_vm11, %vm555_vm10  ;;  %vm713_vm14 = vweird.f32 %v2006_v57 }
 0x5b1   :  { %v551_v55 = vsub.f32 1.0, %v550_v52  ;;  %vm714_vm2 = vmor %vm712_vm15, %vm713_vm14  ;;  %vm891_vm14 = vcmask 523264  }
 0x5b2   :  { %v709_v9 = vsub.f32 1.0, %v708_v61  ;;  %v2376_v61 = vld [vmem:[%s2766_s4 + $0x18] sm:$0xff] }
 0x5b3   :  { %v552_v56 = vmul.f32 %v2004_v50, %v551_v55 }
 0x5b4   :  { %v710_v19 = vmul.f32 %v2006_v57, %v709_v9 }
 0x5b5   :  { %v553_v10 = vadd.f32 %v2004_v50, %v552_v56  ;;  %v2388_v56 = vld [vmem:[%s2766_s4 + $0x8] sm:$0xff] }
 0x5b6   :  { %v711_v18 = vadd.f32 %v2006_v57, %v710_v19 }
 0x5b7   :  { %v557_v20 = vsel %vm556_vm12, %v2004_v50, %v553_v10 }
 0x5b8   :  { %v562_v22 = vsel %vm559_vm13, %v561_v21, %v557_v20  ;;  %v715_v31 = vsel %vm714_vm2, %v2006_v57, %v711_v18  ;;  %v2401_v20 = vld [vmem:[%s2769_s7 + $0x2] ss:$0 sm:$0xff]  ;;  %v2406_v18 = vld [vmem:[%s2769_s7 + $0x3] ss:$0 sm:$0xff] }
 0x5b9   :  { %v563_v26 = vmul.f32 %v2322_v33, %v562_v22  ;;  %v720_v39 = vsel %vm717_vm3, %v719_v34, %v715_v31  ;;  %v2437_v31 = vld [vmem:[%s2768_s6 + $0x18] sm:$0xff] }
 0x5ba   :  { %v721_v43 = vmul.f32 %v2318_v28, %v720_v39  ;;  %v2107_v28 = vmov 32.0   ;;  %v2448_v39 = vld [vmem:[%s2768_s6 + $0x10] sm:$0xff] }
 0x5bb   :  { %v564_v46 = vadd.f32 %v563_v26, %v484_v8 }
 0x5bf   :  { %v487_v6 = vpop.permute.xlu1 %486 }
 0x5c0   :  { %507 = vmatpush.msrb.mxu0 %v487_v6 }
 0x5c1   :  { %1901 = vmatmul.msk.f32.vlgmr.msrb.gmra.mxu0 %vm100_vm1, %v484_v8 }
 0x5c2   :  { %665 = vmatpush.msra.mxu0 %v645_v7  ;;  %v627_v17 = vpop.xlane.xlu2 %626 }
 0x5c3   :  { %2007 = vrcp.f32 %v627_v17  ;;  %v639_v35 = vand.u32 2147483648, %v627_v17  ;;  %v637_v37 = vand.u32 2147483647, %v627_v17  ;;  %vm633_vm7 = vweird.f32 %v627_v17 }
 0x5c4   :  { %2009 = vrcp.f32 %v2107_v28  ;;  %877 = vmatpush.msrb.mxu0 %v2376_v61  ;;  %v2476_v28 = vld [vmem:[%s2769_s7 + $0x1] ss:$0 sm:$0xff] }
 0x5c5   :  { %v640_v41 = vor.u32 1.1754944e-38, %v639_v35  ;;  %vm638_vm9 = vcmp.eq.f32.partialorder %v637_v37, 8.507059e+37 }
 0x5c7   :  { %v724_v60 = vpop.permute.xlu1 %723 }
 0x5c9   :  { %v2008_v23 = vpop.eup %2007 }
 0x5ca   :  { %v629_v27 = vmul.f32 %v2008_v23, %v627_v17  ;;  %v566_v29 = vpop.permute.xlu2 %565  ;;  %vm634_vm6 = vweird.f32 %v2008_v23 }
 0x5cb   :  { %586 = vmatpush.msra.mxu1 %v566_v29  ;;  %vm635_vm8 = vmor %vm633_vm7, %vm634_vm6  ;;  %v2431_v29 = vld [vmem:[%s2768_s6 + $0x20] sm:$0xff] }
 0x5cc   :  { %v630_v32 = vsub.f32 1.0, %v629_v27  ;;  %1904 = vmatmul.msk.f32.vlgmr.msra.gmra.mxu1 %vm100_vm1, %v563_v26  ;;  %v2419_v26 = vld [vmem:[%s2768_s6 + $0x30] sm:$0xff]  ;;  %v2425_v27 = vld [vmem:[%s2768_s6 + $0x28] sm:$0xff] }
 0x5cd   :  { %744 = vmatpush.msrb.mxu1 %v724_v60  ;;  %907 = vmatpush.msrb.mxu2 %v2419_v26 }
 0x5ce   :  { %v631_v36 = vmul.f32 %v2008_v23, %v630_v32 }
 0x5cf   :  { %991 = vmatpush.msra.mxu1 %v2163_v0  ;;  %908 = vmatpush.msrb.mxu2 %v2425_v27 }
 0x5d0   :  { %v632_v33 = vadd.f32 %v2008_v23, %v631_v36 }
 0x5d1   :  { %992 = vmatpush.msra.mxu1 %v2168_v1  ;;  %909 = vmatpush.msrb.mxu2 %v2431_v29 }
 0x5d2   :  { %v636_v42 = vsel %vm635_vm8, %v2008_v23, %v632_v33  ;;  %v2454_v33 = vld [vmem:[%s2768_s6 + $0x8] sm:$0xff] }
 0x5d3   :  { %993 = vmatpush.msra.mxu1 %v2174_v2  ;;  %v641_v45 = vsel %vm638_vm9, %v640_v41, %v636_v42  ;;  %v2010_v2 = vpop.eup %2009  ;;  %910 = vmatpush.msrb.mxu2 %v2437_v31  ;;  %v2460_v41 = vld [vmem:[%s2768_s6] sm:$0xff] }
 0x5d4   :  { %1910 = vmatmul.msk.f32.vlgmr.msrb.gmra.mxu1 %vm100_vm1, %v721_v43  ;;  %v642_v47 = vmul.f32 %v2328_v38, %v641_v45  ;;  %v806_v48 = vmul.f32 32.0, %v2010_v2  ;;  %vm810_vm10 = vweird.f32 %v2010_v2  ;;  %v2466_v42 = vld [vmem:[%s2767_s5] ss:$0 sm:$0xff] }
 0x5d5   :  { %994 = vmatpush.msra.mxu1 %v2179_v3  ;;  %911 = vmatpush.msrb.mxu2 %v2448_v39 }
 0x5d6   :  { %v643_v0 = vadd.f32 %v642_v47, %v564_v46  ;;  %1907 = vmatmul.msk.f32.vlgmr.msra.gmra.mxu0 %vm100_vm1, %v642_v47  ;;  %v807_v49 = vsub.f32 1.0, %v806_v48 }
 0x5d7   :  { %912 = vmatpush.msrb.mxu2 %v2454_v33 }
 0x5d8   :  { %v722_v1 = vadd.f32 %v721_v43, %v643_v0  ;;  %v808_v50 = vmul.f32 %v2010_v2, %v807_v49 }
 0x5d9   :  { %913 = vmatpush.msrb.mxu2 %v2460_v41 }
 0x5da   :  { %v749_v63 = vmul.f32 0.25, %v722_v1  ;;  %v809_v51 = vadd.f32 %v2010_v2, %v808_v50 }
 0x5dc   :  { %1911 = vst.msk [vmem:[%s2771_s9 + $0x8] sm:$0xff] %vm100_vm1, %v749_v63  ;;  %v2365_v38 = vsel %vm810_vm10, %v2010_v2, %v809_v51 }
 0x615   :  { %v801_v3 = vpop.xlane.xlu0 %800 }
 0x616   :  { %v812_v52 = vmul.f32 %v2365_v38, %v801_v3 }
 0x618   :  { %v814_v53 = vsub.f32 %v2345_v44, %v812_v52  ;;  %v2382_v44 = vld [vmem:[%s2766_s4 + $0x10] sm:$0xff] }
 0x619   :  { %878 = vmatpush.msrb.mxu0 %v2382_v44 }
 0x61a   :  { %v816_v54 = vmul.f32 %v814_v53, %v814_v53 }
 0x61b   :  { %879 = vmatpush.msrb.mxu0 %v2388_v56 }
 0x61c   :  { %v818_v4 = vsel %vm65_vm0, %v816_v54, 0.0 }
 0x61d   :  { %819 = vadd.xlane.f32.xlu2 %v818_v4  ;;  %880 = vmatpush.msrb.mxu0 %v2393_v62 }
 0x63e   :  { %v509_v57 = vpop.f32.mrf.mxu0 }
 0x649   :  { %v588_v55 = vpop.f32.mrf.mxu1 }
 0x64a   :  { %753 = vrot.lane.b32.xlu1 %v588_v55, %s2104_s11 }
 0x651   :  { %v746_v59 = vpop.f32.mrf.mxu1 }
 0x653   :  { %v667_v58 = vpop.f32.mrf.mxu0 }
 0x654   :  { %757 = vrot.lane.b32.xlu1 %v667_v58, %s2105_s14 }
 0x65c   :  { %761 = vrot.lane.b32.xlu1 %v746_v59, %s2106_s15 }
 0x690   :  { %v820_v6 = vpop.xlane.xlu2 %819 }
 0x691   :  { %v824_v8 = vmul.f32 %v820_v6, %v2365_v38 }
 0x693   :  { %v826_v9 = vadd.f32 1e-05, %v824_v8 }
 0x695   :  { %2011 = vrsqrt.f32 %v826_v9  ;;  %vm834_vm12 = vweird.f32 %v826_v9 }
 0x69b   :  { %v2012_v10 = vpop.eup %2011 }
 0x69c   :  { %v829_v15 = vmul.f32 %v2012_v10, %v826_v9  ;;  %vm835_vm11 = vweird.f32 %v2012_v10 }
 0x69d   :  { %vm836_vm13 = vmor %vm834_vm12, %vm835_vm11 }
 0x69e   :  { %v830_v7 = vmul.f32 %v2012_v10, %v829_v15 }
 0x6a0   :  { %v831_v16 = vmul.f32 0.5, %v830_v7 }
 0x6a2   :  { %v832_v17 = vsub.f32 1.5, %v831_v16 }
 0x6a4   :  { %v833_v19 = vmul.f32 %v2012_v10, %v832_v17 }
 0x6a6   :  { %v837_v21 = vsel %vm836_vm13, %v2012_v10, %v833_v19 }
 0x6a7   :  { %v848_v22 = vmul.f32 %v837_v21, %v814_v53 }
 0x6a9   :  { %v851_v23 = vmul.f32 %v2401_v20, %v848_v22 }
 0x6ab   :  { %v854_v24 = vadd.f32 %v2406_v18, %v851_v23 }
 0x6ad   :  { %1914 = vmatmul.msk.f32.vlgmr.msrb.gmra.mxu0 %vm65_vm0, %v854_v24 }
 0x6bc   :  { %v754_v32 = vpop.permute.xlu1 %753 }
 0x6bd   :  { %v764_v34 = vsel %vm100_vm1, %v509_v57, %v754_v32 }
 0x6c6   :  { %v758_v60 = vpop.permute.xlu1 %757 }
 0x6c7   :  { %v765_v35 = vsel %vm429_vm4, %v764_v34, %v758_v60 }
 0x6ce   :  { %v762_v36 = vpop.permute.xlu1 %761 }
 0x6cf   :  { %v766_v37 = vsel %vm431_vm5, %v765_v35, %v762_v36 }
 0x6d0   :  { %1913 = vmatmul.msk.f32.gmra.mxu3 %vm65_vm0, %v766_v37 }
 0x72a   :  { %v882_v43 = vpop.f32.mrf.mxu0 }
 0x72b   :  { %v883_v45 = vadd.f32 %v2466_v42, %v882_v43 }
 0x72d   :  { %v888_v46 = vmax.f32 %v883_v45, 0.0 }
 0x72f   :  { %1916 = vmatmul.msk.f32.vlgmr.msrb.gmra.mxu2 %vm891_vm14, %v888_v46  ;;  %v2497_v46 = vld [vmem:[%s2769_s7 + $0x5] ss:$0 sm:$0xff] }
 0x753   :  { %v794_v47 = vpop.f32.mrf.mxu3 }
 0x754   :  { %v795_v0 = vadd.f32 %v2341_v40, %v794_v47 }
 0x756   :  { %v798_v1 = vadd.f32 %v795_v0, %v2227_v30 }
 0x758   :  { %v802_v63 = vsel %vm65_vm0, %v798_v1, 0.0 }
 0x759   :  { %803 = vadd.xlane.f32.xlu1 %v802_v63 }
 0x7b2   :  { %v915_v2 = vpop.f32.mrf.mxu2 }
 0x7b3   :  { %v916_v48 = vadd.f32 %v2476_v28, %v915_v2 }
 0x7b5   :  { %v921_v49 = vadd.f32 %v916_v48, %v854_v24 }
 0x7b7   :  { %v923_v50 = vsel %vm65_vm0, %v921_v49, 0.0 }
 0x7b8   :  { %924 = vadd.xlane.f32.xlu0 %v923_v50 }
 0x7cc   :  { %v804_v51 = vpop.xlane.xlu1 %803 }
 0x7cd   :  { %v813_v40 = vmul.f32 %v2365_v38, %v804_v51 }
 0x7cf   :  { %v815_v3 = vsub.f32 %v798_v1, %v813_v40 }
 0x7d1   :  { %v817_v30 = vmul.f32 %v815_v3, %v815_v3 }
 0x7d3   :  { %v821_v52 = vsel %vm65_vm0, %v817_v30, 0.0 }
 0x7d4   :  { %822 = vadd.xlane.f32.xlu2 %v821_v52 }
 0x82b   :  { %v925_v53 = vpop.xlane.xlu0 %924 }
 0x82c   :  { %v929_v54 = vmul.f32 %v925_v53, %v2365_v38 }
 0x82e   :  { %v931_v4 = vsub.f32 %v921_v49, %v929_v54 }
 0x830   :  { %v933_v55 = vmul.f32 %v931_v4, %v931_v4 }
 0x832   :  { %v935_v57 = vsel %vm65_vm0, %v933_v55, 0.0 }
 0x833   :  { %936 = vadd.xlane.f32.xlu2 %v935_v57 }
 0x847   :  { %v823_v58 = vpop.xlane.xlu2 %822 }
 0x848   :  { %v825_v59 = vmul.f32 %v823_v58, %v2365_v38 }
 0x84a   :  { %v827_v6 = vadd.f32 1e-05, %v825_v59 }
 0x84c   :  { %2013 = vrsqrt.f32 %v827_v6  ;;  %vm844_vm2 = vweird.f32 %v827_v6 }
 0x852   :  { %v2014_v8 = vpop.eup %2013 }
 0x853   :  { %v839_v9 = vmul.f32 %v2014_v8, %v827_v6  ;;  %vm845_vm15 = vweird.f32 %v2014_v8 }
 0x854   :  { %vm846_vm3 = vmor %vm844_vm2, %vm845_vm15 }
 0x855   :  { %v840_v10 = vmul.f32 %v2014_v8, %v839_v9 }
 0x857   :  { %v841_v15 = vmul.f32 0.5, %v840_v10 }
 0x859   :  { %v842_v7 = vsub.f32 1.5, %v841_v15 }
 0x85b   :  { %v843_v16 = vmul.f32 %v2014_v8, %v842_v7 }
 0x85d   :  { %v847_v17 = vsel %vm846_vm3, %v2014_v8, %v843_v16 }
 0x85e   :  { %v849_v19 = vmul.f32 %v847_v17, %v815_v3 }
 0x860   :  { %v852_v21 = vmul.f32 %v2401_v20, %v849_v19  ;;  %v2492_v20 = vld [vmem:[%s2769_s7 + $0x4] ss:$0 sm:$0xff] }
 0x862   :  { %v855_v22 = vadd.f32 %v2406_v18, %v852_v21 }
 0x864   :  { %1915 = vmatmul.msk.f32.gmra.mxu0 %vm65_vm0, %v855_v22 }
 0x8a6   :  { %v937_v23 = vpop.xlane.xlu2 %936 }
 0x8a7   :  { %v941_v24 = vmul.f32 %v937_v23, %v2365_v38 }
 0x8a9   :  { %v943_v32 = vadd.f32 1e-05, %v941_v24 }
 0x8ab   :  { %2015 = vrsqrt.f32 %v943_v32  ;;  %vm951_vm7 = vweird.f32 %v943_v32 }
 0x8b1   :  { %v2016_v60 = vpop.eup %2015 }
 0x8b2   :  { %v946_v34 = vmul.f32 %v2016_v60, %v943_v32  ;;  %vm952_vm6 = vweird.f32 %v2016_v60 }
 0x8b3   :  { %vm953_vm8 = vmor %vm951_vm7, %vm952_vm6 }
 0x8b4   :  { %v947_v35 = vmul.f32 %v2016_v60, %v946_v34 }
 0x8b6   :  { %v948_v36 = vmul.f32 0.5, %v947_v35 }
 0x8b8   :  { %v949_v37 = vsub.f32 1.5, %v948_v36 }
 0x8ba   :  { %v950_v43 = vmul.f32 %v2016_v60, %v949_v37 }
 0x8bc   :  { %v954_v18 = vsel %vm953_vm8, %v2016_v60, %v950_v43  ;;  %v2059_v43 = vld [vmem:[%s2764_s2] ss:$0 sm:$0xff] }
 0x8bd   :  { %v965_v45 = vmul.f32 %v954_v18, %v931_v4 }
 0x8bf   :  { %v968_v47 = vmul.f32 %v2492_v20, %v965_v45 }
 0x8c1   :  { %v2501_v0 = vadd.f32 %v2497_v46, %v968_v47 }
 0x8c3   :  { %1918 = vmatmul.msk.f32.vlgmr.msra.gmra.mxu1 %vm65_vm0, %v2501_v0 }
 0x8e1   :  { %v885_v1 = vpop.f32.mrf.mxu0 }
 0x8e2   :  { %v886_v63 = vadd.f32 %v2466_v42, %v885_v1 }
 0x8e4   :  { %v889_v2 = vmax.f32 %v886_v63, 0.0 }
 0x8e6   :  { %1917 = vmatmul.msk.f32.gmra.mxu2 %vm891_vm14, %v889_v2 }
 0x940   :  { %v996_v48 = vpop.f32.mrf.mxu1 }
 0x941   :  { %v2508_v49 = vadd.f32 %v2194_v5, %v996_v48 }
 0x943   :  { %1057 = vrot.lane.b32.xlu1 %v2508_v49, %s2093_s1  ;;  %1005 = vrot.lane.b32.xlu0 %v2508_v49, %s2094_s21  ;;  %v1002_v5 = vmul.f32 0.35355338, %v2508_v49 }
 0x94b   :  { %1243 = vrot.lane.b32.xlu1 %v2508_v49, %s2098_s25 }
 0x969   :  { %v918_v50 = vpop.f32.mrf.mxu2 }
 0x96a   :  { %v919_v51 = vadd.f32 %v2476_v28, %v918_v50 }
 0x96c   :  { %v922_v40 = vadd.f32 %v919_v51, %v855_v22 }
 0x96e   :  { %v926_v3 = vsel %vm65_vm0, %v922_v40, 0.0 }
 0x96f   :  { %927 = vadd.xlane.f32.xlu2 %v926_v3 }
 0x9b5   :  { %v1058_v30 = vpop.permute.xlu1 %1057  ;;  %v1006_v52 = vpop.permute.xlu0 %1005 }
 0x9b6   :  { %1920 = vmatpush.xpose.msk.msra.mxu3 %vm100_vm1, %v1006_v52  ;;  %1078 = vmatpush.msra.mxu0 %v1058_v30 }
 0x9b9   :  { %1921 = vmatmul.msk.f32.vlgmr.msra.gmra.mxu3 %vm100_vm1, %v1002_v5 }
 0x9bd   :  { %v1244_v15 = vpop.permute.xlu1 %1243 }
 0x9e2   :  { %v928_v53 = vpop.xlane.xlu2 %927 }
 0x9e3   :  { %v930_v54 = vmul.f32 %v928_v53, %v2365_v38 }
 0x9e5   :  { %v932_v4 = vsub.f32 %v922_v40, %v930_v54 }
 0x9e7   :  { %v934_v55 = vmul.f32 %v932_v4, %v932_v4 }
 0x9e9   :  { %v938_v57 = vsel %vm65_vm0, %v934_v55, 0.0 }
 0x9ea   :  { %939 = vadd.xlane.f32.xlu2 %v938_v57 }
 0xa02   :  { %1085 = vrot.lane.b32.xlu2 %v2508_v49, %s2097_s24 }
 0xa0a   :  { %1083 = vrot.lane.b32.xlu2 %v1002_v5, %s2095_s22 }
 0xa12   :  { %1164 = vrot.lane.b32.xlu2 %v2508_v49, %s2099_s26 }
 0xa1a   :  { %1241 = vrot.lane.b32.xlu2 %v1002_v5, %s2101_s28 }
 0xa3c   :  { %v1029_v58 = vpop.f32.mrf.mxu3 }
 0xa3d   :  { %v1032_v59 = vsel %vm100_vm1, %v1029_v58, -inf }
 0xa3e   :  { %1033 = vmax.xlane.f32.xlu0 %v1032_v59 }
 0xa52   :  { %1162 = vrot.lane.b32.xlu0 %v1002_v5, %s2100_s27 }
 0xa5d   :  { %v940_v6 = vpop.xlane.xlu2 %939 }
 0xa5e   :  { %v942_v8 = vmul.f32 %v940_v6, %v2365_v38 }
 0xa60   :  { %v944_v9 = vadd.f32 1e-05, %v942_v8 }
 0xa62   :  { %2017 = vrsqrt.f32 %v944_v9  ;;  %vm961_vm10 = vweird.f32 %v944_v9 }
 0xa65   :  { %v1086_v10 = vpop.permute.xlu2 %1085 }
 0xa66   :  { %1923 = vmatpush.xpose.msk.msrb.mxu1 %vm100_vm1, %v1086_v10 }
 0xa68   :  { %v2018_v7 = vpop.eup %2017 }
 0xa69   :  { %v956_v16 = vmul.f32 %v2018_v7, %v944_v9  ;;  %vm962_vm9 = vweird.f32 %v2018_v7 }
 0xa6a   :  { %1929 = vmatpush.xpose.msk.msra.mxu1 %vm100_vm1, %v1244_v15  ;;  %vm963_vm11 = vmor %vm961_vm10, %vm962_vm9 }
 0xa6b   :  { %v957_v17 = vmul.f32 %v2018_v7, %v956_v16 }
 0xa6d   :  { %v958_v19 = vmul.f32 0.5, %v957_v17  ;;  %v1084_v21 = vpop.permute.xlu2 %1083 }
 0xa6f   :  { %v959_v22 = vsub.f32 1.5, %v958_v19 }
 0xa71   :  { %v960_v23 = vmul.f32 %v2018_v7, %v959_v22 }
 0xa73   :  { %v964_v24 = vsel %vm963_vm11, %v2018_v7, %v960_v23 }
 0xa74   :  { %v966_v32 = vmul.f32 %v964_v24, %v932_v4 }
 0xa75   :  { %v1165_v60 = vpop.permute.xlu2 %1164 }
 0xa76   :  { %1926 = vmatpush.xpose.msk.msrb.mxu0 %vm100_vm1, %v1165_v60  ;;  %v969_v34 = vmul.f32 %v2492_v20, %v966_v32 }
 0xa78   :  { %v2537_v35 = vadd.f32 %v2497_v46, %v969_v34 }
 0xa7a   :  { %1919 = vmatmul.msk.f32.gmra.mxu1 %vm65_vm0, %v2537_v35 }
 0xa7d   :  { %v1242_v36 = vpop.permute.xlu2 %1241 }
 0xa82   :  { %1924 = vmatmul.msk.f32.vlgmr.msrb.gmra.mxu1 %vm100_vm1, %v1084_v21 }
 0xa8a   :  { %1930 = vmatmul.msk.f32.vlgmr.msra.gmra.mxu1 %vm100_vm1, %v1242_v36 }
 0xab1   :  { %v1034_v47 = vpop.xlane.xlu0 %1033 }
 0xab2   :  { %v1035_v1 = vsub.f32 %v1029_v58, %v1034_v47 }
 0xab4   :  { %v1036_v63 = vmul.f32 1.442695, %v1035_v1 }
 0xab6   :  { %2019 = vpow2.f32 %v1036_v63 }
 0xabc   :  { %v2020_v48 = vpop.eup %2019 }
 0xabd   :  { %v1038_v50 = vsel %vm100_vm1, %v2020_v48, 0.0 }
 0xac4   :  { %v1163_v17 = vpop.permute.xlu0 %1162 }
 0xaf7   :  { %v999_v37 = vpop.f32.mrf.mxu1 }
 0xaf8   :  { %v2546_v18 = vadd.f32 %v2059_v43, %v999_v37 }
 0xafa   :  { %1419 = vrot.lane.b32.xlu2 %v2546_v18, %s2097_s24  ;;  %1339 = vrot.lane.b32.xlu1 %v2546_v18, %s2094_s21  ;;  %v1003_v45 = vmul.f32 0.35355338, %v2546_v18 }
 0xafc   :  { %1496 = vrot.lane.b32.xlu0 %v1003_v45, %s2100_s27 }
 0xaff   :  { %v2558_v2 = vpop.f32.mrf.mxu1 }
 0xb00   :  { %v1111_v52 = vsel %vm100_vm1, %v2558_v2, -inf }
 0xb02   :  { %1498 = vrot.lane.b32.xlu2 %v2546_v18, %s2099_s26  ;;  %1417 = vrot.lane.b32.xlu1 %v1003_v45, %s2095_s22 }
 0xb07   :  { %v2561_v51 = vpop.f32.mrf.mxu1 }
 0xb08   :  { %v1269_v40 = vsel %vm100_vm1, %v2561_v51, -inf }
 0xb0a   :  { %1575 = vrot.lane.b32.xlu2 %v1003_v45, %s2101_s28 }
 0xb2c   :  { %1039 = vadd.xlane.f32.xlu1 %v1038_v50 }
 0xb33   :  { %1270 = vmax.xlane.f32.xlu2 %v1269_v40 }
 0xb45   :  { %1577 = vrot.lane.b32.xlu1 %v2546_v18, %s2098_s25 }
 0xb54   :  { %v1420_v3 = vpop.permute.xlu2 %1419 }
 0xb55   :  { %1936 = vmatpush.xpose.msk.msrb.mxu1 %vm100_vm1, %v1420_v3 }
 0xb5c   :  { %v1499_v10 = vpop.permute.xlu2 %1498 }
 0xb64   :  { %v1576_v19 = vpop.permute.xlu2 %1575 }
 0xb6c   :  { %v1340_v30 = vpop.permute.xlu1 %1339 }
 0xb6f   :  { %1112 = vmax.xlane.f32.xlu1 %v1111_v52 }
 0xb74   :  { %v1418_v5 = vpop.permute.xlu1 %1417 }
 0xb75   :  { %1937 = vmatmul.msk.f32.vlgmr.msrb.gmra.mxu1 %vm100_vm1, %v1418_v5 }
 0xb9f   :  { %v1040_v53 = vpop.xlane.xlu1 %1039 }
 0xba0   :  { %2021 = vrcp.f32 %v1040_v53  ;;  %v1052_v57 = vand.u32 2147483648, %v1040_v53  ;;  %v1050_v59 = vand.u32 2147483647, %v1040_v53  ;;  %vm1046_vm13 = vweird.f32 %v1040_v53 }
 0xba2   :  { %v1053_v8 = vor.u32 1.1754944e-38, %v1052_v57  ;;  %vm1051_vm2 = vcmp.eq.f32.partialorder %v1050_v59, 8.507059e+37 }
 0xba6   :  { %v2022_v54 = vpop.eup %2021 }
 0xba7   :  { %v1042_v4 = vmul.f32 %v2022_v54, %v1040_v53  ;;  %vm1047_vm12 = vweird.f32 %v2022_v54 }
 0xba8   :  { %vm1048_vm15 = vmor %vm1046_vm13, %vm1047_vm12 }
 0xba9   :  { %v1043_v55 = vsub.f32 1.0, %v1042_v4 }
 0xbab   :  { %v1044_v58 = vmul.f32 %v2022_v54, %v1043_v55 }
 0xbad   :  { %v1045_v6 = vadd.f32 %v2022_v54, %v1044_v58 }
 0xbaf   :  { %v1049_v9 = vsel %vm1048_vm15, %v2022_v54, %v1045_v6 }
 0xbb0   :  { %v1054_v15 = vsel %vm1051_vm2, %v1053_v8, %v1049_v9 }
 0xbb1   :  { %v2571_v7 = vmul.f32 %v2020_v48, %v1054_v15 }
 0xbb3   :  { %1922 = vmatmul.msk.f32.vlgmr.msra.gmra.mxu0 %vm100_vm1, %v2571_v7 }
 0xbb4   :  { %1933 = vmatpush.xpose.msk.msra.mxu0 %vm100_vm1, %v1340_v30 }
 0xbb7   :  { %v1578_v16 = vpop.permute.xlu1 %1577 }
 0xbb8   :  { %1942 = vmatpush.xpose.msk.msra.mxu1 %vm100_vm1, %v1578_v16 }
 0xbbb   :  { %1927 = vmatmul.msk.f32.vlgmr.msrb.gmra.mxu0 %vm100_vm1, %v1163_v17  ;;  %1943 = vmatmul.msk.f32.vlgmr.msra.gmra.mxu1 %vm100_vm1, %v1576_v19 }
 0xbbc   :  { %1796 = vmatpush.msrb.mxu1 %v2414_v25  ;;  %1939 = vmatpush.xpose.msk.msrb.mxu0 %vm100_vm1, %v1499_v10  ;;  %v1497_v25 = vpop.permute.xlu0 %1496 }
 0xbbe   :  { %1797 = vmatpush.msrb.mxu1 %v2419_v26 }
 0xbc0   :  { %1798 = vmatpush.msrb.mxu1 %v2425_v27 }
 0xbc2   :  { %1799 = vmatpush.msrb.mxu1 %v2431_v29 }
 0xbc3   :  { %1934 = vmatmul.msk.f32.vlgmr.msra.gmra.mxu0 %vm100_vm1, %v1003_v45 }
 0xbc4   :  { %1800 = vmatpush.msrb.mxu1 %v2437_v31  ;;  %1690 = vmatpush.msra.mxu0 %v2288_v11 }
 0xbc6   :  { %1801 = vmatpush.msrb.mxu1 %v2448_v39  ;;  %1691 = vmatpush.msra.mxu0 %v2294_v12 }
 0xbc8   :  { %1802 = vmatpush.msrb.mxu1 %v2454_v33  ;;  %1692 = vmatpush.msra.mxu0 %v2299_v13  ;;  %v1271_v33 = vpop.xlane.xlu2 %1270 }
 0xbca   :  { %1803 = vmatpush.msrb.mxu1 %v2460_v41  ;;  %1693 = vmatpush.msra.mxu0 %v2306_v14  ;;  %v1272_v14 = vsub.f32 %v2561_v51, %v1271_v33 }
 0xbcb   :  { %1940 = vmatmul.msk.f32.vlgmr.msrb.gmra.mxu0 %vm100_vm1, %v1497_v25 }
 0xbcc   :  { %v1273_v24 = vmul.f32 1.442695, %v1272_v14 }
 0xbe2   :  { %v1113_v11 = vpop.xlane.xlu1 %1112 }
 0xbe3   :  { %v1114_v29 = vsub.f32 %v2558_v2, %v1113_v11 }
 0xbe5   :  { %v1115_v12 = vmul.f32 1.442695, %v1114_v29 }
 0xbe7   :  { %2023 = vpow2.f32 %v1115_v12 }
 0xbe8   :  { %2025 = vpow2.f32 %v1273_v24 }
 0xbed   :  { %v2599_v41 = vpop.eup %2023 }
 0xbee   :  { %v1117_v23 = vsel %vm100_vm1, %v2599_v41, 0.0  ;;  %v2606_v34 = vpop.eup %2025 }
 0xbef   :  { %v1275_v36 = vsel %vm100_vm1, %v2606_v34, 0.0 }
 0xbf2   :  { %v1442_v26 = vpop.f32.mrf.mxu1 }
 0xbf3   :  { %v1445_v27 = vsel %vm100_vm1, %v1442_v26, -inf }
 0xbf4   :  { %1446 = vmax.xlane.f32.xlu0 %v1445_v27 }
 0xc30   :  { %v2596_v31 = vpop.f32.mrf.mxu0 }
 0xc38   :  { %v1187_v39 = vpop.f32.mrf.mxu0  ;;  %v1600_v32 = vpop.f32.mrf.mxu1 }
 0xc39   :  { %v1190_v13 = vsel %vm100_vm1, %v1187_v39, -inf  ;;  %v1603_v60 = vsel %vm100_vm1, %v1600_v32, -inf }
 0xc3a   :  { %1191 = vmax.xlane.f32.xlu0 %v1190_v13 }
 0xc40   :  { %v1363_v21 = vpop.f32.mrf.mxu0 }
 0xc41   :  { %v1366_v22 = vsel %vm100_vm1, %v1363_v21, -inf }
 0xc42   :  { %1367 = vmax.xlane.f32.xlu1 %v1366_v22  ;;  %1118 = vadd.xlane.f32.xlu0 %v1117_v23 }
 0xc48   :  { %v1521_v63 = vpop.f32.mrf.mxu0 }
 0xc49   :  { %v1524_v2 = vsel %vm100_vm1, %v1521_v63, -inf }
 0xc4a   :  { %1604 = vmax.xlane.f32.xlu1 %v1603_v60 }
 0xc52   :  { %1276 = vadd.xlane.f32.xlu1 %v1275_v36 }
 0xc56   :  { %1215 = vrot.lane.b32.xlu0 %v2508_v49, %s2102_s0 }
 0xc5e   :  { %1470 = vrot.lane.b32.xlu0 %v2546_v18, %s2096_s23 }
 0xc67   :  { %v1447_v37 = vpop.xlane.xlu0 %1446 }
 0xc68   :  { %v1448_v43 = vsub.f32 %v1442_v26, %v1447_v37 }
 0xc6a   :  { %v1449_v45 = vmul.f32 1.442695, %v1448_v43 }
 0xc6b   :  { %1136 = vrot.lane.b32.xlu1 %v2508_v49, %s2096_s23 }
 0xc6c   :  { %2027 = vpow2.f32 %v1449_v45 }
 0xc72   :  { %v2616_v47 = vpop.eup %2027 }
 0xc73   :  { %1391 = vrot.lane.b32.xlu1 %v2546_v18, %s2093_s1  ;;  %v1451_v1 = vsel %vm100_vm1, %v2616_v47, 0.0 }
 0xc74   :  { %1452 = vadd.xlane.f32.xlu2 %v1451_v1 }
 0xc7b   :  { %1549 = vrot.lane.b32.xlu1 %v2546_v18, %s2102_s0 }
 0xc7c   :  { %1525 = vmax.xlane.f32.xlu2 %v1524_v2 }
 0xcad   :  { %v1192_v48 = vpop.xlane.xlu0 %1191 }
 0xcae   :  { %v1193_v53 = vsub.f32 %v1187_v39, %v1192_v48 }
 0xcb0   :  { %v1194_v57 = vmul.f32 1.442695, %v1193_v53 }
 0xcb5   :  { %v1368_v50 = vpop.xlane.xlu1 %1367  ;;  %v1119_v3 = vpop.xlane.xlu0 %1118 }
 0xcb6   :  { %v1369_v51 = vsub.f32 %v1363_v21, %v1368_v50  ;;  %v1131_v19 = vand.u32 2147483648, %v1119_v3  ;;  %vm1125_vm6 = vweird.f32 %v1119_v3  ;;  %v1129_v25 = vand.u32 2147483647, %v1119_v3 }
 0xcb8   :  { %v1370_v40 = vmul.f32 1.442695, %v1369_v51  ;;  %v1132_v11 = vor.u32 1.1754944e-38, %v1131_v19  ;;  %vm1130_vm8 = vcmp.eq.f32.partialorder %v1129_v25, 8.507059e+37 }
 0xcba   :  { %2029 = vpow2.f32 %v1370_v40 }
 0xcbb   :  { %2031 = vrcp.f32 %v1119_v3 }
 0xcbd   :  { %v1605_v30 = vpop.xlane.xlu1 %1604 }
 0xcbe   :  { %v1606_v52 = vsub.f32 %v1600_v32, %v1605_v30 }
 0xcc0   :  { %v2625_v5 = vpop.eup %2029  ;;  %v1607_v54 = vmul.f32 1.442695, %v1606_v52 }
 0xcc1   :  { %v1372_v4 = vsel %vm100_vm1, %v2625_v5, 0.0  ;;  %v2032_v55 = vpop.eup %2031 }
 0xcc2   :  { %2033 = vpow2.f32 %v1607_v54  ;;  %1373 = vadd.xlane.f32.xlu0 %v1372_v4  ;;  %v1121_v58 = vmul.f32 %v2032_v55, %v1119_v3  ;;  %vm1126_vm3 = vweird.f32 %v2032_v55 }
 0xcc3   :  { %2035 = vpow2.f32 %v1194_v57  ;;  %vm1127_vm7 = vmor %vm1125_vm6, %vm1126_vm3 }
 0xcc4   :  { %v1122_v9 = vsub.f32 1.0, %v1121_v58 }
 0xcc5   :  { %v1277_v26 = vpop.xlane.xlu1 %1276 }
 0xcc6   :  { %v1123_v15 = vmul.f32 %v2032_v55, %v1122_v9  ;;  %v1289_v48 = vand.u32 2147483648, %v1277_v26  ;;  %vm1283_vm10 = vweird.f32 %v1277_v26 }
 0xcc8   :  { %v2629_v59 = vpop.eup %2033  ;;  %v1216_v6 = vpop.permute.xlu0 %1215  ;;  %v1124_v17 = vadd.f32 %v2032_v55, %v1123_v15  ;;  %v1290_v30 = vor.u32 1.1754944e-38, %v1289_v48 }
 0xcc9   :  { %1236 = vmatpush.msra.mxu2 %v1216_v6  ;;  %v1609_v8 = vsel %vm100_vm1, %v2629_v59, 0.0  ;;  %v2633_v10 = vpop.eup %2035 }
 0xcca   :  { %1610 = vadd.xlane.f32.xlu2 %v1609_v8  ;;  %v1196_v16 = vsel %vm100_vm1, %v2633_v10, 0.0  ;;  %v1128_v27 = vsel %vm1127_vm7, %v2032_v55, %v1124_v17 }
 0xccb   :  { %v1133_v29 = vsel %vm1130_vm8, %v1132_v11, %v1128_v27 }
 0xccc   :  { %v2638_v39 = vmul.f32 %v2599_v41, %v1133_v29 }
 0xcd0   :  { %v1471_v32 = vpop.permute.xlu0 %1470 }
 0xcd2   :  { %1197 = vadd.xlane.f32.xlu2 %v1196_v16 }
 0xcdd   :  { %v1137_v12 = vpop.permute.xlu1 %1136 }
 0xcde   :  { %1157 = vmatpush.msrb.mxu3 %v1137_v12 }
 0xcdf   :  { %1925 = vmatmul.msk.f32.vlgmr.msrb.gmra.mxu3 %vm100_vm1, %v2638_v39 }
 0xce5   :  { %v1392_v13 = vpop.permute.xlu1 %1391 }
 0xce6   :  { %1412 = vmatpush.msrb.mxu2 %v1392_v13 }
 0xce7   :  { %v1453_v33 = vpop.xlane.xlu2 %1452 }
 0xce8   :  { %v1465_v4 = vand.u32 2147483648, %v1453_v33  ;;  %vm1459_vm15 = vweird.f32 %v1453_v33  ;;  %v1463_v55 = vand.u32 2147483647, %v1453_v33 }
 0xcea   :  { %1294 = vrot.lane.b32.xlu2 %v2508_v49, %s2103_s10  ;;  %v1466_v16 = vor.u32 1.1754944e-38, %v1465_v4  ;;  %vm1464_vm3 = vcmp.eq.f32.partialorder %v1463_v55, 8.507059e+37 }
 0xcef   :  { %v1526_v14 = vpop.xlane.xlu2 %1525 }
 0xcf0   :  { %v1527_v21 = vsub.f32 %v1521_v63, %v1526_v14 }
 0xcf2   :  { %v1528_v22 = vmul.f32 1.442695, %v1527_v21 }
 0xcf4   :  { %2037 = vpow2.f32 %v1528_v22  ;;  %v1135_v22 = vadd.f32 %v2638_v39, %v2571_v7 }
 0xcf5   :  { %2039 = vrcp.f32 %v1277_v26 }
 0xcf6   :  { %2041 = vrcp.f32 %v1453_v33 }
 0xcfa   :  { %v2644_v23 = vpop.eup %2037 }
 0xcfb   :  { %v1530_v41 = vsel %vm100_vm1, %v2644_v23, 0.0  ;;  %v2040_v24 = vpop.eup %2039 }
 0xcfc   :  { %1531 = vadd.xlane.f32.xlu0 %v1530_v41  ;;  %v1279_v60 = vmul.f32 %v2040_v24, %v1277_v26  ;;  %v2042_v36 = vpop.eup %2041  ;;  %vm1284_vm9 = vweird.f32 %v2040_v24 }
 0xcfd   :  { %v1455_v37 = vmul.f32 %v2042_v36, %v1453_v33  ;;  %vm1285_vm11 = vmor %vm1283_vm10, %vm1284_vm9  ;;  %vm1460_vm13 = vweird.f32 %v2042_v36 }
 0xcfe   :  { %v1280_v49 = vsub.f32 1.0, %v1279_v60  ;;  %vm1461_vm2 = vmor %vm1459_vm15, %vm1460_vm13 }
 0xcff   :  { %v1456_v63 = vsub.f32 1.0, %v1455_v37 }
 0xd00   :  { %v1281_v1 = vmul.f32 %v2040_v24, %v1280_v49 }
 0xd01   :  { %v1457_v50 = vmul.f32 %v2042_v36, %v1456_v63 }
 0xd02   :  { %v1282_v2 = vadd.f32 %v2040_v24, %v1281_v1 }
 0xd03   :  { %v1458_v52 = vadd.f32 %v2042_v36, %v1457_v50 }
 0xd04   :  { %v1286_v3 = vsel %vm1285_vm11, %v2040_v24, %v1282_v2  ;;  %v1550_v24 = vpop.permute.xlu1 %1549 }
 0xd05   :  { %v1462_v58 = vsel %vm1461_vm2, %v2042_v36, %v1458_v52 }
 0xd06   :  { %v1467_v19 = vsel %vm1464_vm3, %v1466_v16, %v1462_v58 }
 0xd07   :  { %v2659_v13 = vmul.f32 %v2616_v47, %v1467_v19 }
 0xd10   :  { %1628 = vrot.lane.b32.xlu0 %v2546_v18, %s2103_s10  ;;  %v1287_v18 = vand.u32 2147483647, %v1277_v26 }
 0xd12   :  { %vm1288_vm12 = vcmp.eq.f32.partialorder %v1287_v18, 8.507059e+37 }
 0xd13   :  { %v1291_v54 = vsel %vm1288_vm12, %v1290_v30, %v1286_v3 }
 0xd14   :  { %v1292_v15 = vmul.f32 %v2606_v34, %v1291_v54 }
 0xd35   :  { %v2650_v43 = vpop.xlane.xlu0 %1373 }
 0xd36   :  { %2043 = vrcp.f32 %v2650_v43  ;;  %v1386_v14 = vand.u32 2147483648, %v2650_v43  ;;  %vm1380_vm11 = vweird.f32 %v2650_v43  ;;  %v1384_v41 = vand.u32 2147483647, %v2650_v43 }
 0xd38   :  { %v1387_v36 = vor.u32 1.1754944e-38, %v1386_v14  ;;  %vm1385_vm13 = vcmp.eq.f32.partialorder %v1384_v41, 8.507059e+37 }
 0xd3c   :  { %v2044_v40 = vpop.eup %2043 }
 0xd3d   :  { %v2652_v45 = vpop.xlane.xlu2 %1610  ;;  %v1376_v53 = vmul.f32 %v2044_v40, %v2650_v43  ;;  %vm1381_vm9 = vweird.f32 %v2044_v40 }
 0xd3e   :  { %vm1382_vm12 = vmor %vm1380_vm11, %vm1381_vm9  ;;  %v1623_v50 = vand.u32 2147483648, %v2652_v45  ;;  %vm1617_vm2 = vweird.f32 %v2652_v45 }
 0xd3f   :  { %v1377_v6 = vsub.f32 1.0, %v1376_v53 }
 0xd40   :  { %v1624_v30 = vor.u32 1.1754944e-38, %v1623_v50 }
 0xd41   :  { %v1378_v26 = vmul.f32 %v2044_v40, %v1377_v6 }
 0xd43   :  { %v1379_v34 = vadd.f32 %v2044_v40, %v1378_v26 }
 0xd45   :  { %v1198_v51 = vpop.xlane.xlu2 %1197 }
 0xd46   :  { %2045 = vrcp.f32 %v1198_v51  ;;  %v1210_v25 = vand.u32 2147483648, %v1198_v51  ;;  %v1208_v11 = vand.u32 2147483647, %v1198_v51  ;;  %vm1204_vm7 = vweird.f32 %v1198_v51 }
 0xd47   :  { %2047 = vrcp.f32 %v2652_v45 }
 0xd48   :  { %v1211_v12 = vor.u32 1.1754944e-38, %v1210_v25  ;;  %vm1209_vm10 = vcmp.eq.f32.partialorder %v1208_v11, 8.507059e+37 }
 0xd4c   :  { %v2046_v57 = vpop.eup %2045 }
 0xd4d   :  { %v1200_v8 = vmul.f32 %v2046_v57, %v1198_v51  ;;  %v1295_v9 = vpop.permute.xlu2 %1294  ;;  %vm1205_vm6 = vweird.f32 %v2046_v57  ;;  %v2048_v43 = vpop.eup %2047 }
 0xd4e   :  { %1315 = vmatpush.msra.mxu3 %v1295_v9  ;;  %vm1206_vm8 = vmor %vm1204_vm7, %vm1205_vm6  ;;  %v1613_v1 = vmul.f32 %v2048_v43, %v2652_v45  ;;  %vm1618_vm15 = vweird.f32 %v2048_v43 }
 0xd4f   :  { %v1201_v17 = vsub.f32 1.0, %v1200_v8  ;;  %1931 = vmatmul.msk.f32.vlgmr.msra.gmra.mxu3 %vm100_vm1, %v1292_v15  ;;  %vm1619_vm3 = vmor %vm1617_vm2, %vm1618_vm15 }
 0xd50   :  { %1491 = vmatpush.msrb.mxu3 %v1471_v32  ;;  %v1383_v32 = vsel %vm1382_vm12, %v2044_v40, %v1379_v34 }
 0xd51   :  { %v1202_v27 = vmul.f32 %v2046_v57, %v1201_v17  ;;  %v1388_v7 = vsel %vm1385_vm13, %v1387_v36, %v1383_v32 }
 0xd52   :  { %v1389_v37 = vmul.f32 %v2625_v5, %v1388_v7  ;;  %v1614_v5 = vsub.f32 1.0, %v1613_v1 }
 0xd53   :  { %v1203_v29 = vadd.f32 %v2046_v57, %v1202_v27 }
 0xd54   :  { %v1615_v2 = vmul.f32 %v2048_v43, %v1614_v5 }
 0xd55   :  { %v1207_v33 = vsel %vm1206_vm8, %v2046_v57, %v1203_v29  ;;  %v1469_v57 = vadd.f32 %v2659_v13, %v1389_v37 }
 0xd56   :  { %v1212_v21 = vsel %vm1209_vm10, %v1211_v12, %v1207_v33 }
 0xd57   :  { %1938 = vmatmul.msk.f32.vlgmr.msrb.gmra.mxu3 %vm100_vm1, %v2659_v13  ;;  %v1213_v47 = vmul.f32 %v2633_v10, %v1212_v21 }
 0xd59   :  { %v1214_v60 = vadd.f32 %v1213_v47, %v1135_v22  ;;  %1928 = vmatmul.msk.f32.vlgmr.msra.gmra.mxu2 %vm100_vm1, %v1213_v47  ;;  %v2060_v47 = vld [vmem:[%s2769_s7] ss:$0 sm:$0xff] }
 0xd5a   :  { %1570 = vmatpush.msra.mxu2 %v1550_v24 }
 0xd5b   :  { %v1293_v49 = vadd.f32 %v1292_v15, %v1214_v60 }
 0xd5d   :  { %v1320_v39 = vmul.f32 0.25, %v1293_v49 }
 0xd5f   :  { %1932 = vst.msk [vmem:[%s2771_s9 + $0x10] sm:$0xff] %vm100_vm1, %v1320_v39 }
 0xd61   :  { %1935 = vmatmul.msk.f32.vlgmr.msrb.gmra.mxu2 %vm100_vm1, %v1389_v37 }
 0xd62   :  { %v1159_v10 = vpop.f32.mrf.mxu3  ;;  %1769 = vmatpush.msrb.mxu2 %v2376_v61  ;;  %v1616_v61 = vadd.f32 %v2048_v43, %v1615_v2 }
 0xd63   :  { %1324 = vrot.lane.b32.xlu2 %v1159_v10, %s2104_s11 }
 0xd64   :  { %1770 = vmatpush.msrb.mxu2 %v2382_v44  ;;  %v1621_v44 = vand.u32 2147483647, %v2652_v45  ;;  %v1620_v3 = vsel %vm1619_vm3, %v2048_v43, %v1616_v61 }
 0xd66   :  { %1771 = vmatpush.msrb.mxu2 %v2388_v56  ;;  %vm1622_vm8 = vcmp.eq.f32.partialorder %v1621_v44, 8.507059e+37 }
 0xd67   :  { %v1625_v54 = vsel %vm1622_vm8, %v1624_v30, %v1620_v3 }
 0xd68   :  { %1772 = vmatpush.msrb.mxu2 %v2393_v62  ;;  %v1626_v6 = vmul.f32 %v2629_v59, %v1625_v54 }
 0xd6f   :  { %v1532_v63 = vpop.xlane.xlu0 %1531 }
 0xd70   :  { %2049 = vrcp.f32 %v1532_v63  ;;  %v1544_v56 = vand.u32 2147483648, %v1532_v63  ;;  %v1542_v40 = vand.u32 2147483647, %v1532_v63  ;;  %vm1538_vm7 = vweird.f32 %v1532_v63 }
 0xd72   :  { %v1545_v53 = vor.u32 1.1754944e-38, %v1544_v56  ;;  %vm1543_vm10 = vcmp.eq.f32.partialorder %v1542_v40, 8.507059e+37 }
 0xd76   :  { %v2050_v48 = vpop.eup %2049 }
 0xd77   :  { %v1534_v18 = vmul.f32 %v2050_v48, %v1532_v63  ;;  %vm1539_vm6 = vweird.f32 %v2050_v48 }
 0xd78   :  { %vm1540_vm9 = vmor %vm1538_vm7, %vm1539_vm6 }
 0xd79   :  { %v1535_v51 = vsub.f32 1.0, %v1534_v18 }
 0xd7b   :  { %v1536_v62 = vmul.f32 %v2050_v48, %v1535_v51 }
 0xd7d   :  { %v1537_v52 = vadd.f32 %v2050_v48, %v1536_v62 }
 0xd7f   :  { %v1541_v4 = vsel %vm1540_vm9, %v2050_v48, %v1537_v52 }
 0xd80   :  { %v1546_v55 = vsel %vm1543_vm10, %v1545_v53, %v1541_v4  ;;  %v2061_v53 = vld [vmem:[%s2769_s7 + $0x2] ss:$0 sm:$0xff]  ;;  %v2062_v4 = vld [vmem:[%s2769_s7 + $0x3] ss:$0 sm:$0xff] }
 0xd81   :  { %v1547_v45 = vmul.f32 %v2644_v23, %v1546_v55 }
 0xd82   :  { %v1629_v58 = vpop.permute.xlu0 %1628 }
 0xd83   :  { %v1548_v8 = vadd.f32 %v1547_v45, %v1469_v57  ;;  %1941 = vmatmul.msk.f32.vlgmr.msra.gmra.mxu2 %vm100_vm1, %v1547_v45  ;;  %1649 = vmatpush.msra.mxu3 %v1629_v58 }
 0xd84   :  { %1944 = vmatmul.msk.f32.vlgmr.msra.gmra.mxu3 %vm100_vm1, %v1626_v6 }
 0xd85   :  { %v1627_v9 = vadd.f32 %v1626_v6, %v1548_v8 }
 0xd87   :  { %v1654_v15 = vmul.f32 0.25, %v1627_v9 }
 0xd89   :  { %1945 = vst.msk [vmem:[%s2771_s9 + $0x18] sm:$0xff] %vm100_vm1, %v1654_v15 }
 0xdbd   :  { %v1325_v26 = vpop.permute.xlu2 %1324 }
 0xdbe   :  { %v1335_v27 = vsel %vm100_vm1, %v2596_v31, %v1325_v26 }
 0xdd2   :  { %v1317_v16 = vpop.f32.mrf.mxu3 }
 0xdd3   :  { %1332 = vrot.lane.b32.xlu0 %v1317_v16, %s2106_s15 }
 0xdda   :  { %v1493_v23 = vpop.f32.mrf.mxu3 }
 0xddb   :  { %1658 = vrot.lane.b32.xlu2 %v1493_v23, %s2104_s11 }
 0xddc   :  { %v1238_v59 = vpop.f32.mrf.mxu2 }
 0xddd   :  { %1328 = vrot.lane.b32.xlu1 %v1238_v59, %s2105_s14 }
 0xde4   :  { %v1414_v17 = vpop.f32.mrf.mxu2 }
 0xe06   :  { %v1572_v19 = vpop.f32.mrf.mxu2 }
 0xe07   :  { %1662 = vrot.lane.b32.xlu1 %v1572_v19, %s2105_s14  ;;  %v1651_v25 = vpop.f32.mrf.mxu3 }
 0xe08   :  { %1666 = vrot.lane.b32.xlu0 %v1651_v25, %s2106_s15 }
 0xe35   :  { %v1659_v34 = vpop.permute.xlu2 %1658 }
 0xe36   :  { %v1669_v33 = vsel %vm100_vm1, %v1414_v17, %v1659_v34 }
 0xe45   :  { %v1333_v29 = vpop.permute.xlu0 %1332 }
 0xe4f   :  { %v1329_v11 = vpop.permute.xlu1 %1328 }
 0xe50   :  { %v1336_v12 = vsel %vm429_vm4, %v1335_v27, %v1329_v11 }
 0xe51   :  { %v1337_v13 = vsel %vm431_vm5, %v1336_v12, %v1333_v29  ;;  %v2063_v12 = vld [vmem:[%s2767_s5] ss:$0 sm:$0xff]  ;;  %s2108_s5 = smov [#allocation2]  }
 0xe52   :  { %1946 = vmatmul.msk.f32.vlgmr.msra.gmra.mxu0 %vm65_vm0, %v1337_v13  ;;  %s1867_s15 = sshll.u32 %s2108_s5, 4  ;;  %s1868_s15 = int_to_ptr.vmem [resolvable:$true] %s1867_s15 }
 0xe79   :  { %v1663_v14 = vpop.permute.xlu1 %1662 }
 0xe7a   :  { %v1670_v21 = vsel %vm429_vm4, %v1669_v33, %v1663_v14  ;;  %v1667_v22 = vpop.permute.xlu0 %1666 }
 0xe7b   :  { %v1671_v41 = vsel %vm431_vm5, %v1670_v21, %v1667_v22 }
 0xe7c   :  { %1947 = vmatmul.msk.f32.gmra.mxu0 %vm65_vm0, %v1671_v41  ;;  %v2064_v41 = vld [vmem:[%s2769_s7 + $0x1] ss:$0 sm:$0xff] }
 0xecf   :  { %v1695_v31 = vpop.f32.mrf.mxu0 }
 0xed0   :  { %v1696_v24 = vadd.f32 %v2060_v47, %v1695_v31 }
 0xed2   :  { %v1701_v32 = vadd.f32 %v1696_v24, %v2501_v0 }
 0xed4   :  { %v1703_v60 = vsel %vm65_vm0, %v1701_v32, 0.0 }
 0xed5   :  { %1704 = vadd.xlane.f32.xlu2 %v1703_v60 }
 0xef9   :  { %v1698_v36 = vpop.f32.mrf.mxu0 }
 0xefa   :  { %v1699_v49 = vadd.f32 %v2060_v47, %v1698_v36 }
 0xefc   :  { %v1702_v7 = vadd.f32 %v1699_v49, %v2537_v35 }
 0xefe   :  { %v1706_v39 = vsel %vm65_vm0, %v1702_v7, 0.0 }
 0xeff   :  { %1707 = vadd.xlane.f32.xlu1 %v1706_v39 }
 0xf48   :  { %v1705_v37 = vpop.xlane.xlu2 %1704 }
 0xf49   :  { %v1709_v10 = vmul.f32 %v1705_v37, %v2365_v38 }
 0xf4b   :  { %v1711_v43 = vsub.f32 %v1701_v32, %v1709_v10 }
 0xf4d   :  { %v1713_v1 = vmul.f32 %v1711_v43, %v1711_v43 }
 0xf4f   :  { %v1715_v63 = vsel %vm65_vm0, %v1713_v1, 0.0 }
 0xf50   :  { %1716 = vadd.xlane.f32.xlu0 %v1715_v63 }
 0xf72   :  { %v1708_v5 = vpop.xlane.xlu1 %1707 }
 0xf73   :  { %v1710_v0 = vmul.f32 %v1708_v5, %v2365_v38 }
 0xf75   :  { %v1712_v2 = vsub.f32 %v1702_v7, %v1710_v0 }
 0xf77   :  { %v1714_v48 = vmul.f32 %v1712_v2, %v1712_v2 }
 0xf79   :  { %v1718_v18 = vsel %vm65_vm0, %v1714_v48, 0.0 }
 0xf7a   :  { %1719 = vadd.xlane.f32.xlu2 %v1718_v18 }
 0xfc3   :  { %v1717_v35 = vpop.xlane.xlu0 %1716 }
 0xfc4   :  { %v1721_v61 = vmul.f32 %v1717_v35, %v2365_v38 }
 0xfc6   :  { %v1723_v50 = vadd.f32 1e-05, %v1721_v61 }
 0xfc8   :  { %2051 = vrsqrt.f32 %v1723_v50  ;;  %vm1731_vm4 = vweird.f32 %v1723_v50 }
 0xfce   :  { %v2052_v51 = vpop.eup %2051 }
 0xfcf   :  { %v1726_v44 = vmul.f32 %v2052_v51, %v1723_v50  ;;  %vm1732_vm1 = vweird.f32 %v2052_v51 }
 0xfd0   :  { %vm1733_vm5 = vmor %vm1731_vm4, %vm1732_vm1 }
 0xfd1   :  { %v1727_v56 = vmul.f32 %v2052_v51, %v1726_v44 }
 0xfd3   :  { %v1728_v62 = vmul.f32 0.5, %v1727_v56 }
 0xfd5   :  { %v1729_v40 = vsub.f32 1.5, %v1728_v62 }
 0xfd7   :  { %v1730_v3 = vmul.f32 %v2052_v51, %v1729_v40 }
 0xfd9   :  { %v1734_v30 = vsel %vm1733_vm5, %v2052_v51, %v1730_v3 }
 0xfda   :  { %v1745_v52 = vmul.f32 %v1734_v30, %v1711_v43 }
 0xfdc   :  { %v1747_v54 = vmul.f32 %v2061_v53, %v1745_v52 }
 0xfde   :  { %v1749_v55 = vadd.f32 %v2062_v4, %v1747_v54 }
 0xfe0   :  { %1948 = vmatmul.msk.f32.vlgmr.msrb.gmra.mxu2 %vm65_vm0, %v1749_v55 }
 0xfed   :  { %v1720_v57 = vpop.xlane.xlu2 %1719 }
 0xfee   :  { %v1722_v45 = vmul.f32 %v1720_v57, %v2365_v38 }
 0xff0   :  { %v1724_v58 = vadd.f32 1e-05, %v1722_v45  ;;  %v2066_v45 = vld [vmem:[%s2769_s7 + $0x5] ss:$0 sm:$0xff] }
 0xff2   :  { %2053 = vrsqrt.f32 %v1724_v58  ;;  %vm1741_vm12 = vweird.f32 %v1724_v58 }
 0xff8   :  { %v2054_v6 = vpop.eup %2053 }
 0xff9   :  { %v1736_v8 = vmul.f32 %v2054_v6, %v1724_v58  ;;  %vm1742_vm11 = vweird.f32 %v2054_v6 }
 0xffa   :  { %vm1743_vm13 = vmor %vm1741_vm12, %vm1742_vm11 }
 0xffb   :  { %v1737_v9 = vmul.f32 %v2054_v6, %v1736_v8 }
 0xffd   :  { %v1738_v15 = vmul.f32 0.5, %v1737_v9 }
 0xfff   :  { %v1739_v16 = vsub.f32 1.5, %v1738_v15 }
0x1001   :  { %v1740_v23 = vmul.f32 %v2054_v6, %v1739_v16 }
0x1003   :  { %v1744_v59 = vsel %vm1743_vm13, %v2054_v6, %v1740_v23 }
0x1004   :  { %v1746_v17 = vmul.f32 %v1744_v59, %v1712_v2 }
0x1006   :  { %v1748_v19 = vmul.f32 %v2061_v53, %v1746_v17 }
0x1008   :  { %v1750_v25 = vadd.f32 %v2062_v4, %v1748_v19 }
0x100a   :  { %1949 = vmatmul.msk.f32.gmra.mxu2 %vm65_vm0, %v1750_v25 }
0x1063   :  { %v1774_v26 = vpop.f32.mrf.mxu2 }
0x1064   :  { %v1775_v27 = vadd.f32 %v2466_v42, %v1774_v26 }
0x1066   :  { %v1780_v11 = vmax.f32 %v1775_v27, 0.0 }
0x1068   :  { %1950 = vmatmul.msk.f32.vlgmr.msrb.gmra.mxu1 %vm891_vm14, %v1780_v11 }
0x108d   :  { %v1777_v29 = vpop.f32.mrf.mxu2 }
0x108e   :  { %v1778_v13 = vadd.f32 %v2063_v12, %v1777_v29 }
0x1090   :  { %v1781_v34 = vmax.f32 %v1778_v13, 0.0 }
0x1092   :  { %1951 = vmatmul.msk.f32.gmra.mxu1 %vm891_vm14, %v1781_v34 }
0x10e5   :  { %v1805_v33 = vpop.f32.mrf.mxu1 }
0x10e6   :  { %v1806_v14 = vadd.f32 %v2476_v28, %v1805_v33 }
0x10e8   :  { %v1811_v21 = vadd.f32 %v1806_v14, %v1749_v55 }
0x10ea   :  { %v1813_v22 = vsel %vm65_vm0, %v1811_v21, 0.0 }
0x10eb   :  { %1814 = vadd.xlane.f32.xlu1 %v1813_v22 }
0x110f   :  { %v1808_v42 = vpop.f32.mrf.mxu1 }
0x1110   :  { %v1809_v31 = vadd.f32 %v2064_v41, %v1808_v42 }
0x1112   :  { %v1812_v47 = vadd.f32 %v1809_v31, %v1750_v25 }
0x1114   :  { %v1816_v24 = vsel %vm65_vm0, %v1812_v47, 0.0 }
0x1115   :  { %1817 = vadd.xlane.f32.xlu2 %v1816_v24 }
0x115e   :  { %v1815_v32 = vpop.xlane.xlu1 %1814 }
0x115f   :  { %v1819_v60 = vmul.f32 %v1815_v32, %v2365_v38 }
0x1161   :  { %v1821_v36 = vsub.f32 %v1811_v21, %v1819_v60 }
0x1163   :  { %v1823_v49 = vmul.f32 %v1821_v36, %v1821_v36 }
0x1165   :  { %v1825_v28 = vsel %vm65_vm0, %v1823_v49, 0.0 }
0x1166   :  { %1826 = vadd.xlane.f32.xlu0 %v1825_v28 }
0x1188   :  { %v1818_v7 = vpop.xlane.xlu2 %1817 }
0x1189   :  { %v1820_v39 = vmul.f32 %v1818_v7, %v2365_v38 }
0x118b   :  { %v1822_v37 = vsub.f32 %v1812_v47, %v1820_v39 }
0x118d   :  { %v1824_v10 = vmul.f32 %v1822_v37, %v1822_v37 }
0x118f   :  { %v1828_v43 = vsel %vm65_vm0, %v1824_v10, 0.0 }
0x1190   :  { %1829 = vadd.xlane.f32.xlu1 %v1828_v43 }
0x11d9   :  { %v1827_v1 = vpop.xlane.xlu0 %1826 }
0x11da   :  { %v1831_v63 = vmul.f32 %v1827_v1, %v2365_v38 }
0x11dc   :  { %v1833_v5 = vadd.f32 1e-05, %v1831_v63 }
0x11de   :  { %2055 = vrsqrt.f32 %v1833_v5  ;;  %vm1841_vm15 = vweird.f32 %v1833_v5 }
0x11e4   :  { %v2056_v0 = vpop.eup %2055 }
0x11e5   :  { %v1836_v2 = vmul.f32 %v2056_v0, %v1833_v5  ;;  %vm1842_vm14 = vweird.f32 %v2056_v0 }
0x11e6   :  { %vm1843_vm2 = vmor %vm1841_vm15, %vm1842_vm14 }
0x11e7   :  { %v1837_v48 = vmul.f32 %v2056_v0, %v1836_v2 }
0x11e9   :  { %v1838_v18 = vmul.f32 0.5, %v1837_v48 }
0x11eb   :  { %v1839_v35 = vsub.f32 1.5, %v1838_v18 }
0x11ed   :  { %v1840_v61 = vmul.f32 %v2056_v0, %v1839_v35 }
0x11ef   :  { %v1844_v50 = vsel %vm1843_vm2, %v2056_v0, %v1840_v61 }
0x11f0   :  { %v1855_v51 = vmul.f32 %v1844_v50, %v1821_v36 }
0x11f2   :  { %v1857_v44 = vmul.f32 %v2492_v20, %v1855_v51 }
0x11f4   :  { %v1859_v56 = vadd.f32 %v2497_v46, %v1857_v44 }
0x11f6   :  { %1861 = vst.msk [vmem:[#allocation2] sm:$0xff] %vm65_vm0, %v1859_v56 }
0x1203   :  { %v1830_v62 = vpop.xlane.xlu1 %1829 }
0x1204   :  { %v1832_v40 = vmul.f32 %v1830_v62, %v2365_v38  ;;  %v2065_v38 = vld [vmem:[%s2769_s7 + $0x4] ss:$0 sm:$0xff] }
0x1206   :  { %v1834_v3 = vadd.f32 1e-05, %v1832_v40 }
0x1208   :  { %2057 = vrsqrt.f32 %v1834_v3  ;;  %vm1851_vm6 = vweird.f32 %v1834_v3 }
0x120e   :  { %v2058_v30 = vpop.eup %2057 }
0x120f   :  { %v1846_v52 = vmul.f32 %v2058_v30, %v1834_v3  ;;  %vm1852_vm3 = vweird.f32 %v2058_v30 }
0x1210   :  { %vm1853_vm7 = vmor %vm1851_vm6, %vm1852_vm3 }
0x1211   :  { %v1847_v53 = vmul.f32 %v2058_v30, %v1846_v52 }
0x1213   :  { %v1848_v54 = vmul.f32 0.5, %v1847_v53 }
0x1215   :  { %v1849_v4 = vsub.f32 1.5, %v1848_v54 }
0x1217   :  { %v1850_v55 = vmul.f32 %v2058_v30, %v1849_v4 }
0x1219   :  { %v1854_v57 = vsel %vm1853_vm7, %v2058_v30, %v1850_v55 }
0x121a   :  { %v1856_v20 = vmul.f32 %v1854_v57, %v1822_v37 }
0x121c   :  { %v1858_v46 = vmul.f32 %v2065_v38, %v1856_v20 }
0x121e   :  { %v1860_v58 = vadd.f32 %v2066_v45, %v1858_v46 }
0x1220   :  { %1862 = vst.msk [vmem:[#allocation2 + $0x8] sm:$0xff] %vm65_vm0, %v1860_v58 }
0x1221   :  { %1875 = dma.vmem_to_hbm [thread:$0]  %s1868_s15, 256, %s1870_s3, [#allocation3], %s2109_s17, %s2109_s17, %s2104_s11  }
0x1222   :  { %2091 = dma.done.wait [#allocation3], 256  }
0x1223   :  { %2092 = vsyncadd [#allocation3], 4294967040 }
0x1224   :  { %1884 = vsyncpa [#allocation3], 1 }

</bundles_post_ra>
